<compile_context>
chip_gen: v5e
topology: v5e:2x2
jax: 0.10.0
libtpu: 0.0.40
codegen_flags: <defaults>
</compile_context>

<pallas_src>
from functools import partial

import jax
import jax.numpy as jnp
from jax.experimental import pallas as pl
from jax.experimental.pallas import tpu as pltpu


# --------------------------------------------------------------------------
# shared attention core: per-channel attention on (TC, H, W) q/k/v
# (q is pre-scaled by 1/sqrt(W) -- folded into Wq/bq in the wrapper)
# --------------------------------------------------------------------------
def _attention_core(q3, k3, v3):
    qb = q3.astype(jnp.bfloat16)
    kb = k3.astype(jnp.bfloat16)
    vb = v3.astype(jnp.bfloat16)

    # scores[c,h,g] = sum_w q[c,h,w] * k[c,g,w]   (MXU, f32 accumulate)
    scores = jnp.einsum("chw,cgw->chg", qb, kb,
                        preferred_element_type=jnp.float32)

    # numerically-stable softmax in f32, normalization deferred
    m = jnp.max(scores, axis=-1, keepdims=True)
    e = jnp.exp(scores - m)
    l = jnp.sum(e, axis=-1, keepdims=True)            # (TC, H, 1)

    out = jnp.einsum("chg,cgw->chw", e.astype(jnp.bfloat16), vb,
                     preferred_element_type=jnp.float32)
    # divide moved off the VALU onto the EUP
    return out * pl.reciprocal(l, approx=True)


# --------------------------------------------------------------------------
# primary kernel: lane-dense (B, C, H*W) layout
# --------------------------------------------------------------------------
def _attention_kernel_flat(x_ref, wq_ref, wk_ref, wv_ref,
                           bq_ref, bk_ref, bv_ref, o_ref, *, h, w):
    # x_ref: (1, C, H*W)  w*_ref: (TC, C)  b*_ref: (TC, 1)  o_ref: (1, TC, H*W)
    tc = o_ref.shape[1]
    x = x_ref[0].astype(jnp.bfloat16)                 # (C, H*W), lane-dense

    def conv1x1(w_ref, b_ref):
        y = jnp.dot(w_ref[...].astype(jnp.bfloat16), x,
                    preferred_element_type=jnp.float32)
        return y + b_ref[...]                         # (TC, H*W) f32

    q = conv1x1(wq_ref, bq_ref)                       # scale pre-folded
    k = conv1x1(wk_ref, bk_ref)
    v = conv1x1(wv_ref, bv_ref)

    out = _attention_core(q.reshape(tc, h, w),
                          k.reshape(tc, h, w),
                          v.reshape(tc, h, w))        # (TC, H, W) f32
    # lane-dense, unmasked store
    o_ref[0] = out.reshape(tc, h * w).astype(o_ref.dtype)


# --------------------------------------------------------------------------
# fallback kernel: NCHW blocks (same math, known-good lowering structure)
# --------------------------------------------------------------------------
def _attention_kernel_nchw(x_ref, wq_ref, wk_ref, wv_ref,
                           bq_ref, bk_ref, bv_ref, o_ref):
    # x_ref: (1, C, H, W)  w*_ref: (TC, C)  b*_ref: (TC, 1)  o_ref: (1, TC, H, W)
    tc = o_ref.shape[1]
    x = x_ref[0].astype(jnp.bfloat16)                 # (C, H, W)

    def conv1x1(w_ref, b_ref):
        y = jnp.einsum("oc,chw->ohw", w_ref[...].astype(jnp.bfloat16), x,
                       preferred_element_type=jnp.float32)
        return y + b_ref[...].reshape(tc, 1, 1)

    q = conv1x1(wq_ref, bq_ref)                       # scale pre-folded
    k = conv1x1(wk_ref, bk_ref)
    v = conv1x1(wv_ref, bv_ref)
    o_ref[0] = _attention_core(q, k, v).astype(o_ref.dtype)


# --------------------------------------------------------------------------
# wrappers
# --------------------------------------------------------------------------
_COMPILER_PARAMS = dict(
    dimension_semantics=("parallel", "parallel"),
    vmem_limit_bytes=32 * 1024 * 1024,
)


def _run_flat(x, wq_s, wk, wv, bq_s, bk2, bv2, tc):
    B, C, H, W = x.shape
    HW = H * W
    nct = C // tc
    x2 = x.reshape(B, C, HW)                          # lane-dense boundary

    x_spec = pl.BlockSpec((1, C, HW), lambda b, ct: (b, 0, 0))   # resident over ct
    w_spec = pl.BlockSpec((tc, C), lambda b, ct: (ct, 0))
    b_spec = pl.BlockSpec((tc, 1), lambda b, ct: (ct, 0))
    o_spec = pl.BlockSpec((1, tc, HW), lambda b, ct: (b, ct, 0))

    out2 = pl.pallas_call(
        partial(_attention_kernel_flat, h=H, w=W),
        out_shape=jax.ShapeDtypeStruct((B, C, HW), x.dtype),
        grid_spec=pltpu.PrefetchScalarGridSpec(
            num_scalar_prefetch=0,
            grid=(B, nct),
            in_specs=[x_spec, w_spec, w_spec, w_spec, b_spec, b_spec, b_spec],
            out_specs=o_spec,
        ),
        compiler_params=pltpu.CompilerParams(**_COMPILER_PARAMS),
    )(x2, wq_s, wk, wv, bq_s, bk2, bv2)
    return out2.reshape(B, C, H, W)


def _run_nchw(x, wq_s, wk, wv, bq_s, bk2, bv2, tc):
    B, C, H, W = x.shape
    nct = C // tc

    x_spec = pl.BlockSpec((1, C, H, W), lambda b, ct: (b, 0, 0, 0))
    w_spec = pl.BlockSpec((tc, C), lambda b, ct: (ct, 0))
    b_spec = pl.BlockSpec((tc, 1), lambda b, ct: (ct, 0))
    o_spec = pl.BlockSpec((1, tc, H, W), lambda b, ct: (b, ct, 0, 0))

    return pl.pallas_call(
        _attention_kernel_nchw,
        out_shape=jax.ShapeDtypeStruct((B, C, H, W), x.dtype),
        grid_spec=pltpu.PrefetchScalarGridSpec(
            num_scalar_prefetch=0,
            grid=(B, nct),
            in_specs=[x_spec, w_spec, w_spec, w_spec, b_spec, b_spec, b_spec],
            out_specs=o_spec,
        ),
        compiler_params=pltpu.CompilerParams(**_COMPILER_PARAMS),
    )(x, wq_s, wk, wv, bq_s, bk2, bv2)


def custom_attention(x, wq, wk, wv, bq, bk, bv, *, channel_tile=None):
    B, C, H, W = x.shape
    scale = 1.0 / float(W) ** 0.5

    if channel_tile is None:
        # full C when small; otherwise an 8-aligned tile (sublane alignment)
        channel_tile = C if C <= 8 else (8 if C % 8 == 0 else C)
    tc = channel_tile
    assert C % tc == 0, "channel tile must divide C"

    # fold the 1/sqrt(W) score scale into the q projection (host side, free)
    wq_s = wq * scale
    bq_s = (bq * scale).reshape(C, 1)
    bk2 = bk.reshape(C, 1)
    bv2 = bv.reshape(C, 1)

    try:
        out = _run_flat(x, wq_s, wk, wv, bq_s, bk2, bv2, tc)
        return jax.block_until_ready(out)
    except Exception:
        # Fallback for Mosaic builds that reject the (TC,H*W)<->(TC,H,W)
        # minor-dim reshapes; keeps every other optimization.
        return _run_nchw(x, wq_s, wk, wv, bq_s, bk2, bv2, tc)


# --------------------------------------------------------------------------
# pure-JAX reference (f32)
# --------------------------------------------------------------------------
def reference(x, wq, wk, wv, bq, bk, bv):
    def conv(w, b):
        return jnp.einsum("oc,bchw->bohw", w, x) + b.reshape(1, -1, 1, 1)
    q, k, v = conv(wq, bq), conv(wk, bk), conv(wv, bv)
    scores = jnp.einsum("bchw,bcgw->bchg", q, k) / (x.shape[-1] ** 0.5)
    probs = jax.nn.softmax(scores, axis=-1)
    return jnp.einsum("bchg,bcgw->bchw", probs, v)


if __name__ == "__main__":
    B, C, H, W = 2, 4, 16, 16

    key = jax.random.PRNGKey(0)
    kx, kq, kk, kv, kbq, kbk, kbv = jax.random.split(key, 7)

    x = jax.random.normal(kx, (B, C, H, W), dtype=jnp.float32)
    # Conv2d(channels, channels, 1) weights: (C_out, C_in, 1, 1) -> (C, C)
    wq = jax.random.normal(kq, (C, C), dtype=jnp.float32) * 0.1
    wk = jax.random.normal(kk, (C, C), dtype=jnp.float32) * 0.1
    wv = jax.random.normal(kv, (C, C), dtype=jnp.float32) * 0.1
    bq = jax.random.normal(kbq, (C,), dtype=jnp.float32) * 0.1
    bk = jax.random.normal(kbk, (C,), dtype=jnp.float32) * 0.1
    bv = jax.random.normal(kbv, (C,), dtype=jnp.float32) * 0.1

    out = custom_attention(x, wq, wk, wv, bq, bk, bv)
    out = jax.block_until_ready(out)

    ref = reference(x, wq, wk, wv, bq, bk, bv)
    assert out.shape == (B, C, H, W)
    max_err = float(jnp.max(jnp.abs(out - ref)))
    # bf16 MXU operands + approx reciprocal -> loosened tolerance (f32 accum kept)
    assert jnp.allclose(out, ref, atol=2e-2, rtol=2e-2), (
        f"mismatch vs reference (max abs err {max_err})")

    print("KERNEL_OK")
</pallas_src>

<mosaic_0001>
module attributes {stable_mosaic.version = 11 : i64} {
  func.func @_attention_kernel_flat(%arg0: i32, %arg1: i32, %arg2: memref<1x4x256xf32, #tpu.memory_space<vmem>>, %arg3: memref<4x4xf32, #tpu.memory_space<vmem>>, %arg4: memref<4x4xf32, #tpu.memory_space<vmem>>, %arg5: memref<4x4xf32, #tpu.memory_space<vmem>>, %arg6: memref<4x1xf32, #tpu.memory_space<vmem>>, %arg7: memref<4x1xf32, #tpu.memory_space<vmem>>, %arg8: memref<4x1xf32, #tpu.memory_space<vmem>>, %arg9: memref<1x4x256xf32, #tpu.memory_space<vmem>>) attributes {dimension_semantics = [#tpu.dimension_semantics<parallel>, #tpu.dimension_semantics<parallel>], iteration_bounds = array<i64: 2, 1>, scalar_prefetch = 0 : i64, scratch_operands = 0 : i64, tpu.core_type = #tpu.core_type<tc>, window_params = [{transform_indices = @transform_0, window_bounds = array<i64: 1, 4, 256>}, {transform_indices = @transform_1, window_bounds = array<i64: 4, 4>}, {transform_indices = @transform_2, window_bounds = array<i64: 4, 4>}, {transform_indices = @transform_3, window_bounds = array<i64: 4, 4>}, {transform_indices = @transform_4, window_bounds = array<i64: 4, 1>}, {transform_indices = @transform_5, window_bounds = array<i64: 4, 1>}, {transform_indices = @transform_6, window_bounds = array<i64: 4, 1>}, {transform_indices = @transform_7, window_bounds = array<i64: 1, 4, 256>}]} {
    %c0 = arith.constant 0 : index
    %c0_0 = arith.constant 0 : index
    %c0_1 = arith.constant 0 : index
    %0 = vector.load %arg2[%c0, %c0_0, %c0_1] : memref<1x4x256xf32, #tpu.memory_space<vmem>>, vector<1x4x256xf32>
    %1 = vector.shape_cast %0 : vector<1x4x256xf32> to vector<4x256xf32>
    %2 = arith.truncf %1 : vector<4x256xf32> to vector<4x256xbf16>
    %c0_2 = arith.constant 0 : index
    %c0_3 = arith.constant 0 : index
    %3 = vector.load %arg3[%c0_2, %c0_3] : memref<4x4xf32, #tpu.memory_space<vmem>>, vector<4x4xf32>
    %4 = arith.truncf %3 : vector<4x4xf32> to vector<4x4xbf16>
    %cst = arith.constant dense<0.000000e+00> : vector<4x256xf32>
    %5 = tpu.matmul %4, %2, %cst {dimension_numbers = #tpu.dot_dimension_numbers<[1], [0], [0], [1], [0, 0, 1, 1], [], []>} : vector<4x4xbf16>, vector<4x256xbf16>, vector<4x256xf32> -> vector<4x256xf32>
    %c0_4 = arith.constant 0 : index
    %c0_5 = arith.constant 0 : index
    %6 = vector.load %arg6[%c0_4, %c0_5] : memref<4x1xf32, #tpu.memory_space<vmem>>, vector<4x1xf32>
    %7 = vector.broadcast %6 : vector<4x1xf32> to vector<4x256xf32>
    %8 = arith.addf %5, %7 : vector<4x256xf32>
    %c0_6 = arith.constant 0 : index
    %c0_7 = arith.constant 0 : index
    %9 = vector.load %arg4[%c0_6, %c0_7] : memref<4x4xf32, #tpu.memory_space<vmem>>, vector<4x4xf32>
    %10 = arith.truncf %9 : vector<4x4xf32> to vector<4x4xbf16>
    %cst_8 = arith.constant dense<0.000000e+00> : vector<4x256xf32>
    %11 = tpu.matmul %10, %2, %cst_8 {dimension_numbers = #tpu.dot_dimension_numbers<[1], [0], [0], [1], [0, 0, 1, 1], [], []>} : vector<4x4xbf16>, vector<4x256xbf16>, vector<4x256xf32> -> vector<4x256xf32>
    %c0_9 = arith.constant 0 : index
    %c0_10 = arith.constant 0 : index
    %12 = vector.load %arg7[%c0_9, %c0_10] : memref<4x1xf32, #tpu.memory_space<vmem>>, vector<4x1xf32>
    %13 = vector.broadcast %12 : vector<4x1xf32> to vector<4x256xf32>
    %14 = arith.addf %11, %13 : vector<4x256xf32>
    %c0_11 = arith.constant 0 : index
    %c0_12 = arith.constant 0 : index
    %15 = vector.load %arg5[%c0_11, %c0_12] : memref<4x4xf32, #tpu.memory_space<vmem>>, vector<4x4xf32>
    %16 = arith.truncf %15 : vector<4x4xf32> to vector<4x4xbf16>
    %cst_13 = arith.constant dense<0.000000e+00> : vector<4x256xf32>
    %17 = tpu.matmul %16, %2, %cst_13 {dimension_numbers = #tpu.dot_dimension_numbers<[1], [0], [0], [1], [0, 0, 1, 1], [], []>} : vector<4x4xbf16>, vector<4x256xbf16>, vector<4x256xf32> -> vector<4x256xf32>
    %c0_14 = arith.constant 0 : index
    %c0_15 = arith.constant 0 : index
    %18 = vector.load %arg8[%c0_14, %c0_15] : memref<4x1xf32, #tpu.memory_space<vmem>>, vector<4x1xf32>
    %19 = vector.broadcast %18 : vector<4x1xf32> to vector<4x256xf32>
    %20 = arith.addf %17, %19 : vector<4x256xf32>
    %21 = vector.shape_cast %8 : vector<4x256xf32> to vector<4x16x16xf32>
    %22 = vector.shape_cast %14 : vector<4x256xf32> to vector<4x16x16xf32>
    %23 = vector.shape_cast %20 : vector<4x256xf32> to vector<4x16x16xf32>
    %24 = arith.truncf %21 : vector<4x16x16xf32> to vector<4x16x16xbf16>
    %25 = arith.truncf %22 : vector<4x16x16xf32> to vector<4x16x16xbf16>
    %26 = arith.truncf %23 : vector<4x16x16xf32> to vector<4x16x16xbf16>
    "tpu.trace_start"() <{level = 10 : i32, message = "chw,cgw->chg"}> : () -> ()
    %cst_16 = arith.constant dense<0.000000e+00> : vector<4x16x16xf32>
    %27 = tpu.matmul %24, %25, %cst_16 {dimension_numbers = #tpu.dot_dimension_numbers<[2], [2], [1], [1], [0, 0, 0, 1, 1, 1], [0], [0]>} : vector<4x16x16xbf16>, vector<4x16x16xbf16>, vector<4x16x16xf32> -> vector<4x16x16xf32>
    "tpu.trace_stop"() : () -> ()
    %cst_17 = arith.constant dense<0xFF800000> : vector<4x16xf32>
    %28 = vector.multi_reduction <maximumf>, %27, %cst_17 [2] : vector<4x16x16xf32> to vector<4x16xf32>
    %29 = vector.shape_cast %28 : vector<4x16xf32> to vector<4x16x1xf32>
    %30 = vector.broadcast %29 : vector<4x16x1xf32> to vector<4x16x16xf32>
    %31 = arith.subf %27, %30 : vector<4x16x16xf32>
    %32 = math.exp %31 : vector<4x16x16xf32>
    %cst_18 = arith.constant dense<0.000000e+00> : vector<4x16xf32>
    %33 = vector.multi_reduction <add>, %32, %cst_18 [2] : vector<4x16x16xf32> to vector<4x16xf32>
    %34 = vector.shape_cast %33 : vector<4x16xf32> to vector<4x16x1xf32>
    %35 = arith.truncf %32 : vector<4x16x16xf32> to vector<4x16x16xbf16>
    "tpu.trace_start"() <{level = 10 : i32, message = "chg,cgw->chw"}> : () -> ()
    %cst_19 = arith.constant dense<0.000000e+00> : vector<4x16x16xf32>
    %36 = tpu.matmul %35, %26, %cst_19 {dimension_numbers = #tpu.dot_dimension_numbers<[2], [1], [1], [2], [0, 0, 0, 1, 1, 2], [0], [0]>} : vector<4x16x16xbf16>, vector<4x16x16xbf16>, vector<4x16x16xf32> -> vector<4x16x16xf32>
    "tpu.trace_stop"() : () -> ()
    %37 = tpu.reciprocal %34 {approx = true} : vector<4x16x1xf32> -> vector<4x16x1xf32>
    %38 = vector.broadcast %37 : vector<4x16x1xf32> to vector<4x16x16xf32>
    %39 = arith.mulf %36, %38 : vector<4x16x16xf32>
    %40 = vector.shape_cast %39 : vector<4x16x16xf32> to vector<4x256xf32>
    %c0_20 = arith.constant 0 : index
    %c0_21 = arith.constant 0 : index
    %c0_22 = arith.constant 0 : index
    %41 = vector.load %arg9[%c0_20, %c0_21, %c0_22] : memref<1x4x256xf32, #tpu.memory_space<vmem>>, vector<1x4x256xf32>
    %42 = vector.shape_cast %41 : vector<1x4x256xf32> to vector<4x256xf32>
    %43 = vector.shape_cast %40 : vector<4x256xf32> to vector<1x4x256xf32>
    tpu.vector_store %arg9[%c0_20, %c0_21, %c0_22], %43 {strides = array<i32>} : memref<1x4x256xf32, #tpu.memory_space<vmem>>, vector<1x4x256xf32>,
    return
  }
  func.func @transform_0(%arg0: i32, %arg1: i32) -> (i32, i32, i32) {
    %c0_i32 = arith.constant 0 : i32
    %c0_i32_0 = arith.constant 0 : i32
    %c0_i32_1 = arith.constant 0 : i32
    return %arg0, %c0_i32, %c0_i32_0 : i32, i32, i32
  }
  func.func @transform_1(%arg0: i32, %arg1: i32) -> (i32, i32) {
    %c0_i32 = arith.constant 0 : i32
    %c0_i32_0 = arith.constant 0 : i32
    return %arg1, %c0_i32 : i32, i32
  }
  func.func @transform_2(%arg0: i32, %arg1: i32) -> (i32, i32) {
    %c0_i32 = arith.constant 0 : i32
    %c0_i32_0 = arith.constant 0 : i32
    return %arg1, %c0_i32 : i32, i32
  }
  func.func @transform_3(%arg0: i32, %arg1: i32) -> (i32, i32) {
    %c0_i32 = arith.constant 0 : i32
    %c0_i32_0 = arith.constant 0 : i32
    return %arg1, %c0_i32 : i32, i32
  }
  func.func @transform_4(%arg0: i32, %arg1: i32) -> (i32, i32) {
    %c0_i32 = arith.constant 0 : i32
    %c0_i32_0 = arith.constant 0 : i32
    return %arg1, %c0_i32 : i32, i32
  }
  func.func @transform_5(%arg0: i32, %arg1: i32) -> (i32, i32) {
    %c0_i32 = arith.constant 0 : i32
    %c0_i32_0 = arith.constant 0 : i32
    return %arg1, %c0_i32 : i32, i32
  }
  func.func @transform_6(%arg0: i32, %arg1: i32) -> (i32, i32) {
    %c0_i32 = arith.constant 0 : i32
    %c0_i32_0 = arith.constant 0 : i32
    return %arg1, %c0_i32 : i32, i32
  }
  func.func @transform_7(%arg0: i32, %arg1: i32) -> (i32, i32, i32) {
    %c0_i32 = arith.constant 0 : i32
    %c0_i32_0 = arith.constant 0 : i32
    return %arg0, %arg1, %c0_i32 : i32, i32, i32
  }
}

module attributes {stable_mosaic.version = 11 : i64} {
  func.func @_attention_kernel_nchw(%arg0: i32, %arg1: i32, %arg2: memref<1x4x16x16xf32, #tpu.memory_space<vmem>>, %arg3: memref<4x4xf32, #tpu.memory_space<vmem>>, %arg4: memref<4x4xf32, #tpu.memory_space<vmem>>, %arg5: memref<4x4xf32, #tpu.memory_space<vmem>>, %arg6: memref<4x1xf32, #tpu.memory_space<vmem>>, %arg7: memref<4x1xf32, #tpu.memory_space<vmem>>, %arg8: memref<4x1xf32, #tpu.memory_space<vmem>>, %arg9: memref<1x4x16x16xf32, #tpu.memory_space<vmem>>) attributes {dimension_semantics = [#tpu.dimension_semantics<parallel>, #tpu.dimension_semantics<parallel>], iteration_bounds = array<i64: 2, 1>, scalar_prefetch = 0 : i64, scratch_operands = 0 : i64, tpu.core_type = #tpu.core_type<tc>, window_params = [{transform_indices = @transform_0, window_bounds = array<i64: 1, 4, 16, 16>}, {transform_indices = @transform_1, window_bounds = array<i64: 4, 4>}, {transform_indices = @transform_2, window_bounds = array<i64: 4, 4>}, {transform_indices = @transform_3, window_bounds = array<i64: 4, 4>}, {transform_indices = @transform_4, window_bounds = array<i64: 4, 1>}, {transform_indices = @transform_5, window_bounds = array<i64: 4, 1>}, {transform_indices = @transform_6, window_bounds = array<i64: 4, 1>}, {transform_indices = @transform_7, window_bounds = array<i64: 1, 4, 16, 16>}]} {
    %c0 = arith.constant 0 : index
    %c0_0 = arith.constant 0 : index
    %c0_1 = arith.constant 0 : index
    %c0_2 = arith.constant 0 : index
    %0 = vector.load %arg2[%c0, %c0_0, %c0_1, %c0_2] : memref<1x4x16x16xf32, #tpu.memory_space<vmem>>, vector<1x4x16x16xf32>
    %1 = vector.shape_cast %0 : vector<1x4x16x16xf32> to vector<4x16x16xf32>
    %2 = arith.truncf %1 : vector<4x16x16xf32> to vector<4x16x16xbf16>
    %c0_3 = arith.constant 0 : index
    %c0_4 = arith.constant 0 : index
    %3 = vector.load %arg3[%c0_3, %c0_4] : memref<4x4xf32, #tpu.memory_space<vmem>>, vector<4x4xf32>
    %4 = arith.truncf %3 : vector<4x4xf32> to vector<4x4xbf16>
    "tpu.trace_start"() <{level = 10 : i32, message = "oc,chw->ohw"}> : () -> ()
    %cst = arith.constant dense<0.000000e+00> : vector<4x16x16xf32>
    %5 = tpu.matmul %4, %2, %cst {dimension_numbers = #tpu.dot_dimension_numbers<[1], [0], [0], [1, 2], [0, 0, 1, 1, 1, 2], [], []>} : vector<4x4xbf16>, vector<4x16x16xbf16>, vector<4x16x16xf32> -> vector<4x16x16xf32>
    "tpu.trace_stop"() : () -> ()
    %c0_5 = arith.constant 0 : index
    %c0_6 = arith.constant 0 : index
    %6 = vector.load %arg6[%c0_5, %c0_6] : memref<4x1xf32, #tpu.memory_space<vmem>>, vector<4x1xf32>
    %7 = vector.shape_cast %6 : vector<4x1xf32> to vector<4x1x1xf32>
    %8 = vector.broadcast %7 : vector<4x1x1xf32> to vector<4x16x16xf32>
    %9 = arith.addf %5, %8 : vector<4x16x16xf32>
    %c0_7 = arith.constant 0 : index
    %c0_8 = arith.constant 0 : index
    %10 = vector.load %arg4[%c0_7, %c0_8] : memref<4x4xf32, #tpu.memory_space<vmem>>, vector<4x4xf32>
    %11 = arith.truncf %10 : vector<4x4xf32> to vector<4x4xbf16>
    "tpu.trace_start"() <{level = 10 : i32, message = "oc,chw->ohw"}> : () -> ()
    %cst_9 = arith.constant dense<0.000000e+00> : vector<4x16x16xf32>
    %12 = tpu.matmul %11, %2, %cst_9 {dimension_numbers = #tpu.dot_dimension_numbers<[1], [0], [0], [1, 2], [0, 0, 1, 1, 1, 2], [], []>} : vector<4x4xbf16>, vector<4x16x16xbf16>, vector<4x16x16xf32> -> vector<4x16x16xf32>
    "tpu.trace_stop"() : () -> ()
    %c0_10 = arith.constant 0 : index
    %c0_11 = arith.constant 0 : index
    %13 = vector.load %arg7[%c0_10, %c0_11] : memref<4x1xf32, #tpu.memory_space<vmem>>, vector<4x1xf32>
    %14 = vector.shape_cast %13 : vector<4x1xf32> to vector<4x1x1xf32>
    %15 = vector.broadcast %14 : vector<4x1x1xf32> to vector<4x16x16xf32>
    %16 = arith.addf %12, %15 : vector<4x16x16xf32>
    %c0_12 = arith.constant 0 : index
    %c0_13 = arith.constant 0 : index
    %17 = vector.load %arg5[%c0_12, %c0_13] : memref<4x4xf32, #tpu.memory_space<vmem>>, vector<4x4xf32>
    %18 = arith.truncf %17 : vector<4x4xf32> to vector<4x4xbf16>
    "tpu.trace_start"() <{level = 10 : i32, message = "oc,chw->ohw"}> : () -> ()
    %cst_14 = arith.constant dense<0.000000e+00> : vector<4x16x16xf32>
    %19 = tpu.matmul %18, %2, %cst_14 {dimension_numbers = #tpu.dot_dimension_numbers<[1], [0], [0], [1, 2], [0, 0, 1, 1, 1, 2], [], []>} : vector<4x4xbf16>, vector<4x16x16xbf16>, vector<4x16x16xf32> -> vector<4x16x16xf32>
    "tpu.trace_stop"() : () -> ()
    %c0_15 = arith.constant 0 : index
    %c0_16 = arith.constant 0 : index
    %20 = vector.load %arg8[%c0_15, %c0_16] : memref<4x1xf32, #tpu.memory_space<vmem>>, vector<4x1xf32>
    %21 = vector.shape_cast %20 : vector<4x1xf32> to vector<4x1x1xf32>
    %22 = vector.broadcast %21 : vector<4x1x1xf32> to vector<4x16x16xf32>
    %23 = arith.addf %19, %22 : vector<4x16x16xf32>
    %24 = arith.truncf %9 : vector<4x16x16xf32> to vector<4x16x16xbf16>
    %25 = arith.truncf %16 : vector<4x16x16xf32> to vector<4x16x16xbf16>
    %26 = arith.truncf %23 : vector<4x16x16xf32> to vector<4x16x16xbf16>
    "tpu.trace_start"() <{level = 10 : i32, message = "chw,cgw->chg"}> : () -> ()
    %cst_17 = arith.constant dense<0.000000e+00> : vector<4x16x16xf32>
    %27 = tpu.matmul %24, %25, %cst_17 {dimension_numbers = #tpu.dot_dimension_numbers<[2], [2], [1], [1], [0, 0, 0, 1, 1, 1], [0], [0]>} : vector<4x16x16xbf16>, vector<4x16x16xbf16>, vector<4x16x16xf32> -> vector<4x16x16xf32>
    "tpu.trace_stop"() : () -> ()
    %cst_18 = arith.constant dense<0xFF800000> : vector<4x16xf32>
    %28 = vector.multi_reduction <maximumf>, %27, %cst_18 [2] : vector<4x16x16xf32> to vector<4x16xf32>
    %29 = vector.shape_cast %28 : vector<4x16xf32> to vector<4x16x1xf32>
    %30 = vector.broadcast %29 : vector<4x16x1xf32> to vector<4x16x16xf32>
    %31 = arith.subf %27, %30 : vector<4x16x16xf32>
    %32 = math.exp %31 : vector<4x16x16xf32>
    %cst_19 = arith.constant dense<0.000000e+00> : vector<4x16xf32>
    %33 = vector.multi_reduction <add>, %32, %cst_19 [2] : vector<4x16x16xf32> to vector<4x16xf32>
    %34 = vector.shape_cast %33 : vector<4x16xf32> to vector<4x16x1xf32>
    %35 = arith.truncf %32 : vector<4x16x16xf32> to vector<4x16x16xbf16>
    "tpu.trace_start"() <{level = 10 : i32, message = "chg,cgw->chw"}> : () -> ()
    %cst_20 = arith.constant dense<0.000000e+00> : vector<4x16x16xf32>
    %36 = tpu.matmul %35, %26, %cst_20 {dimension_numbers = #tpu.dot_dimension_numbers<[2], [1], [1], [2], [0, 0, 0, 1, 1, 2], [0], [0]>} : vector<4x16x16xbf16>, vector<4x16x16xbf16>, vector<4x16x16xf32> -> vector<4x16x16xf32>
    "tpu.trace_stop"() : () -> ()
    %37 = tpu.reciprocal %34 {approx = true} : vector<4x16x1xf32> -> vector<4x16x1xf32>
    %38 = vector.broadcast %37 : vector<4x16x1xf32> to vector<4x16x16xf32>
    %39 = arith.mulf %36, %38 : vector<4x16x16xf32>
    %c0_21 = arith.constant 0 : index
    %c0_22 = arith.constant 0 : index
    %c0_23 = arith.constant 0 : index
    %c0_24 = arith.constant 0 : index
    %40 = vector.load %arg9[%c0_21, %c0_22, %c0_23, %c0_24] : memref<1x4x16x16xf32, #tpu.memory_space<vmem>>, vector<1x4x16x16xf32>
    %41 = vector.shape_cast %40 : vector<1x4x16x16xf32> to vector<4x16x16xf32>
    %42 = vector.shape_cast %39 : vector<4x16x16xf32> to vector<1x4x16x16xf32>
    tpu.vector_store %arg9[%c0_21, %c0_22, %c0_23, %c0_24], %42 {strides = array<i32>} : memref<1x4x16x16xf32, #tpu.memory_space<vmem>>, vector<1x4x16x16xf32>,
    return
  }
  func.func @transform_0(%arg0: i32, %arg1: i32) -> (i32, i32, i32, i32) {
    %c0_i32 = arith.constant 0 : i32
    %c0_i32_0 = arith.constant 0 : i32
    %c0_i32_1 = arith.constant 0 : i32
    %c0_i32_2 = arith.constant 0 : i32
    return %arg0, %c0_i32, %c0_i32_0, %c0_i32_1 : i32, i32, i32, i32
  }
  func.func @transform_1(%arg0: i32, %arg1: i32) -> (i32, i32) {
    %c0_i32 = arith.constant 0 : i32
    %c0_i32_0 = arith.constant 0 : i32
    return %arg1, %c0_i32 : i32, i32
  }
  func.func @transform_2(%arg0: i32, %arg1: i32) -> (i32, i32) {
    %c0_i32 = arith.constant 0 : i32
    %c0_i32_0 = arith.constant 0 : i32
    return %arg1, %c0_i32 : i32, i32
  }
  func.func @transform_3(%arg0: i32, %arg1: i32) -> (i32, i32) {
    %c0_i32 = arith.constant 0 : i32
    %c0_i32_0 = arith.constant 0 : i32
    return %arg1, %c0_i32 : i32, i32
  }
  func.func @transform_4(%arg0: i32, %arg1: i32) -> (i32, i32) {
    %c0_i32 = arith.constant 0 : i32
    %c0_i32_0 = arith.constant 0 : i32
    return %arg1, %c0_i32 : i32, i32
  }
  func.func @transform_5(%arg0: i32, %arg1: i32) -> (i32, i32) {
    %c0_i32 = arith.constant 0 : i32
    %c0_i32_0 = arith.constant 0 : i32
    return %arg1, %c0_i32 : i32, i32
  }
  func.func @transform_6(%arg0: i32, %arg1: i32) -> (i32, i32) {
    %c0_i32 = arith.constant 0 : i32
    %c0_i32_0 = arith.constant 0 : i32
    return %arg1, %c0_i32 : i32, i32
  }
  func.func @transform_7(%arg0: i32, %arg1: i32) -> (i32, i32, i32, i32) {
    %c0_i32 = arith.constant 0 : i32
    %c0_i32_0 = arith.constant 0 : i32
    %c0_i32_1 = arith.constant 0 : i32
    return %arg0, %arg1, %c0_i32, %c0_i32_0 : i32, i32, i32, i32
  }
}

</mosaic_0001>

<bundles_post_ra>
// kernel: tpu_custom_call.1
= control target key start
LH: loop header
LB: loop body
LE: loop exit
PB: predicated region body
PF: predicated region fallthrough
CT: control target
= control target key end

     0   :  { %12 = vsyncpa [#allocation3], 0  ;;  %s2627_s0 = inlined_call_operand.hbm [shape: f32[2,4,256], index: 0, kind: input, shape index: {}]   ;;  %s2628_s1 = inlined_call_operand.vmem [shape: f32[4,4], index: 1, kind: input, shape index: {}]   ;;  %s2629_s2 = inlined_call_operand.vmem [shape: f32[4,4], index: 2, kind: input, shape index: {}]   ;;  %s2630_s3 = inlined_call_operand.vmem [shape: f32[4,4], index: 3, kind: input, shape index: {}]   ;;  %s2631_s4 = inlined_call_operand.vmem [shape: f32[4,1], index: 4, kind: input, shape index: {}]   ;;  %s2632_s5 = inlined_call_operand.vmem [shape: f32[4,1], index: 5, kind: input, shape index: {}]   ;;  %s2633_s6 = inlined_call_operand.vmem [shape: f32[4,1], index: 6, kind: input, shape index: {}]   ;;  %s2634_s7 = inlined_call_operand.hbm [shape: f32[2,4,256], index: 7, kind: output, shape index: {}]  }
   0x1   :  { %14 = vsyncpa [#allocation3 + $0x1], 0 }
   0x2   :  { %15 = vsyncpa [#allocation4], 0 }
   0x3   :  { %17 = vsyncpa [#allocation4 + $0x1], 0  ;;  %s2161_s24 = smov 0   ;;  %s2163_s25 = smov 0  }
   0x4   :  { %s2165_s26 = smov 0   ;;  %s2167_s27 = smov 0  }
   0x5   :  { %s2169_s28 = smov 0   ;;  %s2171_s29 = smov 0  }
   0x6 LB: > { %s1749_s30 = sadd.s32 4294967295, %s2109_s29   ;;  %s1750_s8 = sadd.s32 4294967294, %s2109_s29   ;;  %s2109_s29 = sphi %s2171_s29, %s23_s29   ;;  %s2105_s28 = sphi %s2169_s28, %s2643_s28   ;;  %s2101_s27 = sphi %s2167_s27, %s2642_s27   ;;  %s2097_s26 = sphi %s2165_s26, %s2641_s26   ;;  %s2093_s25 = sphi %s2163_s25, %s2640_s25   ;;  %s2089_s24 = sphi %s2161_s24, %s2639_s24  }
   0x7   : > { %s35_s9 = sadd.s32 1, %s2105_s28  ;;  %s42_s10 = sadd.s32 1, %s2097_s26 }
   0x8   : > { %p37_p0 = scmp.ge.s32.totalorder %s35_s9, 2  ;;  %p49_p1 = scmp.ne.s32.totalorder %s2097_s26, %s2093_s25 }
   0x9   : > { %p50_p2 = scmp.eq.s32.totalorder %s2109_s29, 0  ;;  %p55_p3 = scmp.ne.s32.totalorder %s2093_s25, %s2089_s24 }
   0xa   : > { %s2645_s9 = smov (%p37_p0, %s35_s9), 0  ;;  %p56_p5 = scmp.eq.s32.totalorder %s1749_s30, 0 }
   0xb   : > { %p2202_p4 = por %p50_p2, %p49_p1  ;;  %s39_s12 = ssub.s32 %s2105_s28, %s2645_s9 }
   0xc   : > { %p237_p6 = scmp.eq.s32.totalorder %s1749_s30, 1  ;;  %p40_p7 = scmp.eq.s32.totalorder %s39_s12, 0 }
   0xd   : > { %p2208_p8 = por %p56_p5, %p55_p3  ;;  %p243_p10 = scmp.eq.s32.totalorder %s1750_s8, 1 }
   0xe   : > { %p2212_p9 = por %p237_p6, %p49_p1  ;;  %p1758_p12 = scmp.ge.s32.totalorder %s2109_s29, 2 }
   0xf   : > { %s2217_s15 = scalar_select %p40_p7, %s2097_s26, %s42_s10  }
  0x10   : > { %p2219_p11 = por %p243_p10, %p55_p3  ;;  %p1798_p13 = scmp.lt.s32.totalorder %s2109_s29, 2 }
  0x11   : > { %s305_s17 = sand.u32 1, %s2097_s26   ;;  %s1784_s19 = sshll.u32 %s2105_s28, 3 }
  0x12   : > { %s1759_s18 = sshll.u32 %s305_s17, 3  ;;  %s314_s22 = scalar_lea.hbm %s2627_s0, %s1784_s19 }
  0x13   : > { %s309_s23 = scalar_lea.vmem [#allocation2], %s1759_s18  ;;  %s316_s12 = sshll.u32 %s314_s22, 4  ;;  %s317_s12 = int_to_ptr.hbm [resolvable:$true] %s316_s12 }
  0x14   : > { %s318_s30 = sshll.u32 %s309_s23, 4  ;;  %p1791_p0 = pnand %p1798_p13, %p2202_p4  ;;  %s319_s30 = int_to_ptr.vmem [resolvable:$true] %s318_s30 }
  0x15   : > { %p1762_p1 = scmp.ge.s32.totalorder %s2109_s29, 1  ;;  %p323_p2 = scmp.lt.s32.totalorder %s2109_s29, 3 }
  0x16   : > { %s306_s8 = scalar_lea.sflag [#allocation3], %s305_s17 }
  0x17   : > { %1793 = dma.hbm_to_vmem [thread:$0]  (!%p1791_p0), %s317_s12, 128, %s319_s30, %s306_s8  }
  0x18   : > { %p324_p3 = pnand %p1762_p1, %p323_p2 }
  0x19   : > { %s2235_s10 = sand.u32 (!%p324_p3), 1, %s2093_s25  }
  0x1a   : > { %327 = sbr.rel (%p324_p3) target bundleno = 927 (0x39f), region = 48  ;;  %s1763_s18 = sshll.u32 (!%p324_p3), %s2235_s10, 3 }
  0x1b   : > { %s330_s19 = scalar_lea.sflag (!%p324_p3), [#allocation3], %s2235_s10  ;;  %s333_s20 = scalar_lea.vmem (!%p324_p3), [#allocation2], %s1763_s18 }
  0x1f   : > { %2080 = dma.done.wait (%p2208_p8), %s330_s19, 128  }
  0x20   : > { %2082 = vsyncadd (%p2208_p8), %s330_s19, 4294967168  ;;  %v2111_v0 = vmov 0   ;;  %v414_v1 = vld [vmem:[%s333_s20] sm:$0xff]  ;;  %v470_v2 = vld [vmem:[%s2632_s5] sm:$0xf]  ;;  %vm435_vm0 = vcmask 1041408  }
  0x21   : > { %1858 = vset.pattern.permute.xlu0 %v2111_v0  ;;  %1929 = vset.pattern.permute.xlu1 %v2111_v0  ;;  %416 = vst [vmem:[#allocation1] ss:$2 sm:$0xff] %v414_v1  ;;  %v425_v3 = vld [vmem:[%s2631_s4] sm:$0xf]  ;;  %vm431_vm1 = vcmask 31744   ;;  %s2112_s20 = smov 96  }
  0x22   : > { %473 = vperm.xlu0 %1858, %v470_v2   ;;  %v423_v4 = vld [vmem:[%s2628_s1] sm:$0xf]  ;;  %s2113_s11 = smov 112   ;;  %s2114_s17 = smov 80   ;;  %v2119_v38 = vmov 1983009808  }
  0x23   : > { %v468_v9 = vld [vmem:[%s2629_s2] sm:$0xf]  ;;  %v424_v12 = vpack.c.bf16 %v423_v4, %v423_v4  ;;  %s2115_s21 = smov 48   ;;  %s2116_s22 = smov 16   ;;  %v590_v39 = vunpack.c.l.s4 %v2119_v38  ;;  %vm587_vm2 = vcmask 1047556   ;;  %vm1045_vm3 = vcmask 130048  }
  0x24   : > { %v469_v13 = vpack.c.bf16 %v468_v9, %v468_v9  ;;  %v505_v15 = vld [vmem:[%s2630_s3] sm:$0xf]  ;;  %s2117_s23 = smov 64   ;;  %s2118_s30 = smov 32   ;;  %v2120_v60 = vmov 1934713408  }
  0x25   : > { %v506_v17 = vpack.c.bf16 %v505_v15, %v505_v15  ;;  %v507_v32 = vld [vmem:[%s2633_s6] sm:$0xf]  ;;  %v2285_v45 = vunpack.c.0.s8 %v590_v39  ;;  %v616_v61 = vunpack.c.l.s4 %v2120_v60  ;;  %vm1533_vm4 = vcmask 261120   ;;  %s1785_s8 = sshll.u32 %s2101_s27, 3  ;;  %s2047_s12 = scalar_lea.hbm %s2634_s7, 16 }
  0x26   : > { %vm1535_vm5 = vcmask 392192   ;;  %vm1537_vm6 = vcmask 523264   ;;  %vm1539_vm7 = vcmask 654336   ;;  %vm1543_vm8 = vcmask 916480  }
  0x27   : > { %v2301_v9 = vunpack.c.0.s8 %v616_v61  ;;  %vm1541_vm9 = vcmask 785408   ;;  %vm1555_vm10 = vcmask 1043456  }
  0x28   : > { %v417_v5 = vld.sshfl [vmem:[#allocation1] sm:$0xff pattern:$0x75316420]  ;;  %v418_v6 = vld.sshfl [vmem:[#allocation1 + $0x8] sm:$0xff pattern:$0x75316420] }
  0x29   : > { %v421_v7 = vpack.c.bf16 %v417_v5, %v417_v5  ;;  %v422_v8 = vpack.c.bf16 %v418_v6, %v418_v6 }
  0x2a   : > { %428 = vperm.xlu0 %1858, %v425_v3  }
  0x2b   : > { %v437_v10 = vsel %vm435_vm0, %v421_v7, 0  ;;  %v440_v11 = vsel %vm435_vm0, %v422_v8, 0 }
  0x2c   : > { %449 = vmatpush.bf16.msra.mxu0 %v437_v10  ;;  %462 = vmatpush.bf16.msra.mxu1 %v440_v11 }
  0x2d   : > { %486 = vmatpush.bf16.msra.mxu2 %v437_v10  ;;  %499 = vmatpush.bf16.msra.mxu3 %v440_v11 }
  0x2f   : > { %1765 = vmatmul.msk.bf16.vlgmr.msra.gmra.mxu0 %vm431_vm1, %v424_v12  ;;  %1766 = vmatmul.msk.bf16.vlgmr.msra.gmra.mxu1 %vm431_vm1, %v424_v12 }
  0x30   : > { %523 = vmatpush.bf16.msrb.mxu0 %v437_v10  ;;  %536 = vmatpush.bf16.msrb.mxu1 %v440_v11 }
  0x31   : > { %1767 = vmatmul.msk.bf16.vlgmr.msra.gmra.mxu2 %vm431_vm1, %v469_v13  ;;  %1768 = vmatmul.msk.bf16.vlgmr.msra.gmra.mxu3 %vm431_vm1, %v469_v13 }
  0x3f   : > { %1769 = vmatmul.msk.bf16.vlgmr.msrb.gmra.mxu0 %vm431_vm1, %v506_v17  ;;  %1770 = vmatmul.msk.bf16.vlgmr.msrb.gmra.mxu1 %vm431_vm1, %v506_v17 }
  0x94   : > { %v474_v14 = vpop.permute.xlu0 %473 }
  0x9c   : > { %v429_v16 = vpop.permute.xlu0 %428 }
  0xac   : > { %v451_v18 = vpop.f32.mrf.mxu0  ;;  %v464_v19 = vpop.f32.mrf.mxu1 }
  0xad   : > { %v452_v20 = vadd.f32 %v451_v18, %v429_v16  ;;  %v465_v21 = vadd.f32 %v464_v19, %v429_v16 }
  0xaf   : > { %v1869_v22 = vpack.i.bf16 %v465_v21, %v452_v20 }
  0xb1   : > { %1870 = vrot.lane.b32.xlu2 %v1869_v22, %s2112_s20  ;;  %1865 = vrot.lane.b32.xlu1 %v1869_v22, %s2113_s11 }
  0xb2   : > { %1860 = vrot.lane.b32.xlu0 %v1869_v22, %s2114_s17 }
  0xb4   : > { %v488_v23 = vpop.f32.mrf.mxu2  ;;  %v501_v24 = vpop.f32.mrf.mxu3 }
  0xb5   : > { %v489_v25 = vadd.f32 %v488_v23, %v474_v14  ;;  %v502_v26 = vadd.f32 %v501_v24, %v474_v14  ;;  %v453_v27 = vpop.f32.mrf.mxu0  ;;  %v466_v28 = vpop.f32.mrf.mxu1 }
  0xb7   : > { %v1884_v29 = vpack.i.bf16 %v502_v26, %v489_v25 }
  0xb9   : > { %1885 = vrot.lane.b32.xlu2 %v1884_v29, %s2112_s20  ;;  %1875 = vrot.lane.b32.xlu1 %v1884_v29, %s2114_s17 }
  0xba   : > { %1895 = vrot.lane.b32.xlu0 %v1884_v29, %s2115_s21 }
  0xbc   : > { %v490_v30 = vpop.f32.mrf.mxu2  ;;  %v503_v31 = vpop.f32.mrf.mxu3 }
  0xbd   : > { %v2299_v7 = vpop.f32.mrf.mxu0  ;;  %v2303_v10 = vpop.f32.mrf.mxu1 }
  0xc1   : > { %1890 = vrot.lane.b32.xlu2 %v1884_v29, %s2116_s22  ;;  %1880 = vrot.lane.b32.xlu1 %v1884_v29, %s2113_s11 }
  0xc2   : > { %1900 = vrot.lane.b32.xlu0 %v1869_v22, %s2116_s22 }
  0xc9   : > { %1915 = vrot.lane.b32.xlu2 %v1884_v29, %s2117_s23  ;;  %1905 = vrot.lane.b32.xlu1 %v1884_v29, %s2118_s30 }
  0xca   : > { %1925 = vrot.lane.b32.xlu0 %v1869_v22, %s2117_s23 }
  0xd1   : > { %1920 = vrot.lane.b32.xlu2 %v1869_v22, %s2118_s30  ;;  %1910 = vrot.lane.b32.xlu1 %v1869_v22, %s2115_s21 }
  0xd9   : > { %510 = vperm.xlu1 %1929, %v507_v32  }
 0x10b   : > { %v1871_v33 = vpop.permute.xlu2 %1870 }
 0x10c   : > { %v1873_v35 = vunpack.i.h.bf16 %v1871_v33  ;;  %v1872_v36 = vunpack.i.l.bf16 %v1871_v33 }
 0x10e   : > { %v643_v40 = vrot.slane %v1873_v35, 4  ;;  %v586_v41 = vrot.slane %v1872_v36, 4  ;;  %v527_v36 = vpop.f32.mrf.mxu0 }
 0x110   : > { %v644_v47 = vsel %vm587_vm2, %v643_v40, %v465_v21  ;;  %v588_v50 = vsel %vm587_vm2, %v586_v41, %v452_v20  ;;  %v540_v41 = vpop.f32.mrf.mxu1 }
 0x111   : > { %v648_v57 = vperm.slane %v644_v47, %v2285_v45  ;;  %v592_v59 = vperm.slane %v588_v50, %v2285_v45 }
 0x113   : > { %v1886_v34 = vpop.permute.xlu2 %1885  ;;  %v669_v5 = vrot.slane %v648_v57, 4  ;;  %v613_v8 = vrot.slane %v592_v59, 4 }
 0x114   : > { %v1888_v42 = vunpack.i.h.bf16 %v1886_v34  ;;  %v1887_v43 = vunpack.i.l.bf16 %v1886_v34 }
 0x116   : > { %v799_v51 = vrot.slane %v1888_v42, 4  ;;  %v743_v52 = vrot.slane %v1887_v43, 4 }
 0x118   : > { %v800_v1 = vsel %vm587_vm2, %v799_v51, %v502_v26  ;;  %v744_v2 = vsel %vm587_vm2, %v743_v52, %v489_v25 }
 0x119   : > { %v804_v11 = vperm.slane %v800_v1, %v2285_v45  ;;  %v748_v12 = vperm.slane %v744_v2, %v2285_v45 }
 0x11b   : > { %v2283_v37 = vpop.permute.xlu2 %1890  ;;  %v825_v21 = vrot.slane %v804_v11, 4  ;;  %v769_v22 = vrot.slane %v748_v12, 4 }
 0x11c   : > { %v1893_v19 = vunpack.i.h.bf16 %v2283_v37  ;;  %v1892_v20 = vunpack.i.l.bf16 %v2283_v37 }
 0x11e   : > { %v817_v37 = vrot.slane %v1893_v19, 4  ;;  %v761_v38 = vrot.slane %v1892_v20, 4 }
 0x123   : > { %v1866_v44 = vpop.permute.xlu1 %1865  ;;  %v2290_v58 = vpop.permute.xlu2 %1915 }
 0x124   : > { %v1861_v46 = vpop.permute.xlu0 %1860  ;;  %v1868_v53 = vunpack.i.h.bf16 %v1866_v44  ;;  %v1867_v54 = vunpack.i.l.bf16 %v1866_v44  ;;  %v1918_v47 = vunpack.i.h.bf16 %v2290_v58 }
 0x125   : > { %v1863_v48 = vunpack.i.h.bf16 %v1861_v46  ;;  %v1862_v49 = vunpack.i.l.bf16 %v1861_v46 }
 0x127   : > { %v649_v55 = vrot.slane %v1863_v48, 4  ;;  %v593_v56 = vrot.slane %v1862_v49, 4  ;;  %v1917_v48 = vunpack.i.l.bf16 %v2290_v58 }
 0x129   : > { %v650_v62 = vsel %vm587_vm2, %v649_v55, %v1868_v53  ;;  %v594_v63 = vsel %vm587_vm2, %v593_v56, %v1867_v54 }
 0x12a   : > { %v654_v0 = vperm.slane %v650_v62, %v2285_v45  ;;  %v598_v3 = vperm.slane %v594_v63, %v2285_v45 }
 0x12b   : > { %v1876_v4 = vpop.permute.xlu1 %1875  ;;  %v1921_v25 = vpop.permute.xlu2 %1920 }
 0x12c   : > { %v1896_v6 = vpop.permute.xlu0 %1895  ;;  %v667_v13 = vrot.slane %v654_v0, 4  ;;  %v670_v14 = vsel %vm587_vm2, %v654_v0, %v669_v5  ;;  %v611_v15 = vrot.slane %v598_v3, 4  ;;  %v614_v16 = vsel %vm587_vm2, %v598_v3, %v613_v8 }
 0x12d   : > { %v1878_v17 = vunpack.i.h.bf16 %v1876_v4  ;;  %v1877_v18 = vunpack.i.l.bf16 %v1876_v4  ;;  %v2312_v23 = vperm.slane %v670_v14, %v2301_v9  ;;  %v2315_v24 = vperm.slane %v614_v16, %v2301_v9 }
 0x12e   : > { %v668_v26 = vsel %vm587_vm2, %v667_v13, %v648_v57  ;;  %v612_v27 = vsel %vm587_vm2, %v611_v15, %v592_v59  ;;  %v1898_v31 = vunpack.i.h.bf16 %v1896_v6  ;;  %v1897_v32 = vunpack.i.l.bf16 %v1896_v6 }
 0x12f   : > { %v805_v28 = vrot.slane %v1878_v17, 4  ;;  %v749_v29 = vrot.slane %v1877_v18, 4  ;;  %v1923_v39 = vunpack.i.h.bf16 %v1921_v25  ;;  %v1922_v40 = vunpack.i.l.bf16 %v1921_v25 }
 0x130   : > { %v2320_v42 = vperm.slane %v668_v26, %v2301_v9  ;;  %v2323_v43 = vperm.slane %v612_v27, %v2301_v9  ;;  %v697_v51 = vrot.slane %v2312_v23, 4  ;;  %v641_v52 = vrot.slane %v2315_v24, 4 }
 0x131   : > { %v818_v53 = vsel %vm587_vm2, %v817_v37, %v1898_v31  ;;  %v762_v54 = vsel %vm587_vm2, %v761_v38, %v1897_v32  ;;  %v655_v55 = vrot.slane %v1923_v39, 4  ;;  %v599_v56 = vrot.slane %v1922_v40, 4 }
 0x132   : > { %v637_v61 = vrot.slane %v2323_v43, 4  ;;  %v693_v62 = vrot.slane %v2320_v42, 4  ;;  %v822_v63 = vperm.slane %v818_v53, %v2285_v45  ;;  %v766_v0 = vperm.slane %v762_v54, %v2285_v45 }
 0x133   : > { %v1881_v30 = vpop.permute.xlu1 %1880 }
 0x134   : > { %v1883_v33 = vunpack.i.h.bf16 %v1881_v30  ;;  %v1882_v34 = vunpack.i.l.bf16 %v1881_v30  ;;  %v1901_v35 = vpop.permute.xlu0 %1900 }
 0x135   : > { %v1903_v4 = vunpack.i.h.bf16 %v1901_v35  ;;  %v1902_v5 = vunpack.i.l.bf16 %v1901_v35 }
 0x136   : > { %v750_v44 = vsel %vm587_vm2, %v749_v29, %v1882_v34  ;;  %v806_v46 = vsel %vm587_vm2, %v805_v28, %v1883_v33 }
 0x137   : > { %v754_v49 = vperm.slane %v750_v44, %v2285_v45  ;;  %v810_v50 = vperm.slane %v806_v46, %v2285_v45  ;;  %v661_v26 = vrot.slane %v1903_v4, 4  ;;  %v605_v27 = vrot.slane %v1902_v5, 4 }
 0x139   : > { %v767_v57 = vrot.slane %v754_v49, 4  ;;  %v823_v59 = vrot.slane %v810_v50, 4  ;;  %v770_v60 = vsel %vm587_vm2, %v754_v49, %v769_v22  ;;  %v826_v58 = vsel %vm587_vm2, %v810_v50, %v825_v21 }
 0x13a   : > { %v2344_v14 = vperm.slane %v770_v60, %v2301_v9  ;;  %v2347_v15 = vperm.slane %v826_v58, %v2301_v9  ;;  %v779_v21 = vrot.slane %v766_v0, 4 }
 0x13b   : > { %v1906_v1 = vpop.permute.xlu1 %1905  ;;  %v768_v2 = vsel %vm587_vm2, %v767_v57, %v748_v12  ;;  %v824_v3 = vsel %vm587_vm2, %v823_v59, %v804_v11  ;;  %v835_v11 = vrot.slane %v822_v63, 4 }
 0x13c   : > { %v1908_v6 = vunpack.i.h.bf16 %v1906_v1  ;;  %v1907_v8 = vunpack.i.l.bf16 %v1906_v1  ;;  %v1926_v13 = vpop.permute.xlu0 %1925  ;;  %v774_v20 = vperm.slane %v768_v2, %v2301_v9  ;;  %v830_v12 = vperm.slane %v824_v3, %v2301_v9 }
 0x13d   : > { %v1928_v16 = vunpack.i.h.bf16 %v1926_v13  ;;  %v1927_v17 = vunpack.i.l.bf16 %v1926_v13  ;;  %v797_v36 = vrot.slane %v2344_v14, 4  ;;  %v853_v37 = vrot.slane %v2347_v15, 4 }
 0x13e   : > { %v811_v18 = vrot.slane %v1908_v6, 4  ;;  %v755_v19 = vrot.slane %v1907_v8, 4  ;;  %v793_v34 = vrot.slane %v774_v20, 4  ;;  %v849_v35 = vrot.slane %v830_v12, 4 }
 0x13f   : > { %v656_v22 = vsel %vm587_vm2, %v655_v55, %v1928_v16  ;;  %v600_v25 = vsel %vm587_vm2, %v599_v56, %v1927_v17 }
 0x140   : > { %v812_v28 = vsel %vm587_vm2, %v811_v18, %v1918_v47  ;;  %v756_v29 = vsel %vm587_vm2, %v755_v19, %v1917_v48  ;;  %v660_v32 = vperm.slane %v656_v22, %v2285_v45  ;;  %v604_v33 = vperm.slane %v600_v25, %v2285_v45 }
 0x141   : > { %v816_v30 = vperm.slane %v812_v28, %v2285_v45  ;;  %v760_v31 = vperm.slane %v756_v29, %v2285_v45 }
 0x142   : > { %v681_v50 = vrot.slane %v660_v32, 4  ;;  %v625_v53 = vrot.slane %v604_v33, 4 }
 0x143   : > { %v837_v38 = vrot.slane %v816_v30, 4  ;;  %v781_v39 = vrot.slane %v760_v31, 4  ;;  %v1911_v40 = vpop.permute.xlu1 %1910  ;;  %v780_v41 = vsel %vm587_vm2, %v779_v21, %v760_v31  ;;  %v836_v44 = vsel %vm587_vm2, %v835_v11, %v816_v30 }
 0x144   : > { %v1913_v46 = vunpack.i.h.bf16 %v1911_v40  ;;  %v1912_v47 = vunpack.i.l.bf16 %v1911_v40  ;;  %v786_v48 = vperm.slane %v780_v41, %v2301_v9  ;;  %v842_v49 = vperm.slane %v836_v44, %v2301_v9 }
 0x145   : > { %v782_v54 = vsel %vm587_vm2, %v766_v0, %v781_v39  ;;  %v838_v55 = vsel %vm587_vm2, %v822_v63, %v837_v38 }
 0x146   : > { %v606_v56 = vsel %vm587_vm2, %v605_v27, %v1912_v47  ;;  %v662_v57 = vsel %vm587_vm2, %v661_v26, %v1913_v46  ;;  %v794_v59 = vsel %vm587_vm2, %v786_v48, %v793_v34  ;;  %v850_v60 = vsel %vm587_vm2, %v842_v49, %v849_v35 }
 0x147   : > { %v610_v58 = vperm.slane %v606_v56, %v2285_v45  ;;  %v666_v1 = vperm.slane %v662_v57, %v2285_v45  ;;  %v1021_v2 = vpack.c.bf16 %v794_v59, %v794_v59  ;;  %v1022_v3 = vpack.c.bf16 %v850_v60, %v850_v60 }
 0x148   : > { %v791_v4 = vrot.slane %v786_v48, 4  ;;  %v847_v5 = vrot.slane %v842_v49, 4  ;;  %v790_v0 = vperm.slane %v782_v54, %v2301_v9  ;;  %v846_v63 = vperm.slane %v838_v55, %v2301_v9 }
 0x149   : > { %v623_v6 = vrot.slane %v610_v58, 4  ;;  %v626_v8 = vsel %vm587_vm2, %v610_v58, %v625_v53  ;;  %v679_v13 = vrot.slane %v666_v1, 4  ;;  %v682_v16 = vsel %vm587_vm2, %v666_v1, %v681_v50 }
 0x14a   : > { %v2378_v17 = vperm.slane %v626_v8, %v2301_v9  ;;  %v2381_v18 = vperm.slane %v682_v16, %v2301_v9  ;;  %v1073_v19 = vunpack.c.l.b16 %v1021_v2  ;;  %v1074_v11 = vunpack.c.l.b16 %v1022_v3 }
 0x14b   : > { %v624_v21 = vsel %vm587_vm2, %v623_v6, %v604_v33  ;;  %v680_v22 = vsel %vm587_vm2, %v679_v13, %v660_v32  ;;  %v511_v25 = vpop.permute.xlu1 %510  ;;  %v792_v26 = vsel %vm587_vm2, %v791_v4, %v774_v20  ;;  %v848_v27 = vsel %vm587_vm2, %v847_v5, %v830_v12 }
 0x14c   : > { %v639_v28 = vrot.slane %v2378_v17, 4  ;;  %v695_v29 = vrot.slane %v2381_v18, 4  ;;  %v2390_v30 = vadd.f32 %v2299_v7, %v511_v25  ;;  %v2393_v31 = vadd.f32 %v2303_v10, %v511_v25 }
 0x14d   : > { %v1075_v34 = vpack.c.b16 %v1074_v11, %v1073_v19  ;;  %v1019_v35 = vpack.c.bf16 %v792_v26, %v792_v26  ;;  %v1020_v33 = vpack.c.bf16 %v848_v27, %v848_v27  ;;  %v798_v32 = vsel %vm587_vm2, %v790_v0, %v797_v36 }
 0x14e   : > { %v2398_v20 = vpack.i.bf16 %v2393_v31, %v2390_v30  ;;  %v854_v12 = vsel %vm587_vm2, %v846_v63, %v853_v37  ;;  %v1025_v38 = vpack.c.bf16 %v798_v32, %v798_v32  ;;  %v795_v44 = vrot.slane %v790_v0, 4 }
 0x14f   : > { %v1080_v39 = vsel %vm1045_vm3, %v1075_v34, 0  ;;  %v1042_v40 = vunpack.c.l.b16 %v1019_v35  ;;  %v1043_v7 = vunpack.c.l.b16 %v1020_v33  ;;  %v1026_v41 = vpack.c.bf16 %v854_v12, %v854_v12 }
 0x150   : > { %1089 = vmatpush.bf16.xpose.msrb.mxu3 %v1080_v39  ;;  %1941 = vrot.lane.b32.xlu1 %v2398_v20, %s2112_s20  ;;  %v1133_v10 = vunpack.c.l.b16 %v1025_v38  ;;  %v851_v46 = vrot.slane %v846_v63, 4  ;;  %v630_v36 = vperm.slane %v624_v21, %v2301_v9  ;;  %v686_v48 = vperm.slane %v680_v22, %v2301_v9 }
 0x151   : > { %1936 = vrot.lane.b32.xlu0 %v2398_v20, %s2113_s11  ;;  %v1044_v47 = vpack.c.b16 %v1043_v7, %v1042_v40  ;;  %v1134_v37 = vunpack.c.l.b16 %v1026_v41  ;;  %v642_v49 = vsel %vm587_vm2, %v2378_v17, %v641_v52  ;;  %v796_v50 = vsel %vm587_vm2, %v795_v44, %v2344_v14  ;;  %1931 = vrot.lane.b32.xlu2 %v2398_v20, %s2114_s17 }
 0x152   : > { %v852_v53 = vsel %vm587_vm2, %v851_v46, %v2347_v15  ;;  %v638_v54 = vsel %vm587_vm2, %v630_v36, %v637_v61  ;;  %v635_v55 = vrot.slane %v630_v36, 4  ;;  %v1023_v59 = vpack.c.bf16 %v796_v50, %v796_v50 }
 0x153   : > { %v1050_v56 = vsel %vm1045_vm3, %v1044_v47, 0  ;;  %v1135_v57 = vpack.c.b16 %v1134_v37, %v1133_v10  ;;  %v1024_v60 = vpack.c.bf16 %v852_v53, %v852_v53  ;;  %v694_v52 = vsel %vm587_vm2, %v686_v48, %v693_v62 }
 0x154   : > { %1059 = vmatpush.bf16.xpose.msrb.mxu2 %v1050_v56  ;;  %v1013_v58 = vpack.c.bf16 %v638_v54, %v638_v54  ;;  %v636_v14 = vsel %vm587_vm2, %v635_v55, %v2323_v43  ;;  %v691_v15 = vrot.slane %v686_v48, 4  ;;  %v1103_v2 = vunpack.c.l.b16 %v1023_v59 }
 0x155   : > { %v1140_v1 = vsel %vm1045_vm3, %v1135_v57, 0  ;;  %v1104_v61 = vunpack.c.l.b16 %v1024_v60  ;;  %v1014_v3 = vpack.c.bf16 %v694_v52, %v694_v52  ;;  %v1011_v0 = vpack.c.bf16 %v636_v14, %v636_v14 }
 0x156   : > { %1149 = vmatpush.bf16.xpose.msra.mxu1 %v1140_v1  ;;  %v1068_v4 = vunpack.c.l.b16 %v1013_v58  ;;  %v692_v5 = vsel %vm587_vm2, %v691_v15, %v2320_v42  ;;  %v698_v62 = vsel %vm587_vm2, %v2381_v18, %v697_v51  ;;  %v1017_v8 = vpack.c.bf16 %v642_v49, %v642_v49 }
 0x157   : > { %v1105_v63 = vpack.c.b16 %v1104_v61, %v1103_v2  ;;  %v1069_v6 = vunpack.c.l.b16 %v1014_v3  ;;  %v1012_v43 = vpack.c.bf16 %v692_v5, %v692_v5  ;;  %v1037_v13 = vunpack.c.l.b16 %v1011_v0 }
 0x158   : > { %v1018_v16 = vpack.c.bf16 %v698_v62, %v698_v62  ;;  %v640_v17 = vsel %vm587_vm2, %v639_v28, %v2315_v24  ;;  %v1128_v42 = vunpack.c.l.b16 %v1017_v8  ;;  %1956 = vrot.lane.b32.xlu1 %v2398_v20, %s2118_s30  ;;  %v696_v51 = vsel %vm587_vm2, %v695_v29, %v2312_v23 }
 0x159   : > { %v1110_v19 = vsel %vm1045_vm3, %v1105_v63, 0  ;;  %v1070_v11 = vpack.c.b16 %v1069_v6, %v1068_v4  ;;  %v1038_v21 = vunpack.c.l.b16 %v1012_v43  ;;  %v1015_v18 = vpack.c.bf16 %v640_v17, %v640_v17  ;;  %1951 = vrot.lane.b32.xlu0 %v2398_v20, %s2115_s21  ;;  %1946 = vrot.lane.b32.xlu2 %v2398_v20, %s2116_s22 }
 0x15a   : > { %1119 = vmatpush.bf16.xpose.msra.mxu0 %v1110_v19  ;;  %v1129_v22 = vunpack.c.l.b16 %v1018_v16  ;;  %v1016_v26 = vpack.c.bf16 %v696_v51, %v696_v51 }
 0x15b   : > { %1772 = vmatmul.msk.bf16.vlgmr.msrb.gmra.mxu3 %vm1045_vm3, %v1070_v11  ;;  %v1039_v25 = vpack.c.b16 %v1038_v21, %v1037_v13  ;;  %v1098_v24 = vunpack.c.l.b16 %v1015_v18 }
 0x15c   : > { %v1130_v27 = vpack.c.b16 %v1129_v22, %v1128_v42  ;;  %v1099_v28 = vunpack.c.l.b16 %v1016_v26 }
 0x15d   : > { %1771 = vmatmul.msk.bf16.vlgmr.msrb.gmra.mxu2 %vm1045_vm3, %v1039_v25 }
 0x15e   : > { %1774 = vmatmul.msk.bf16.vlgmr.msra.gmra.mxu1 %vm1045_vm3, %v1130_v27  ;;  %v1100_v34 = vpack.c.b16 %v1099_v28, %v1098_v24 }
 0x160   : > { %1961 = vrot.lane.b32.xlu1 %v2398_v20, %s2117_s23 }
 0x161   : > { %1773 = vmatmul.msk.bf16.vlgmr.msra.gmra.mxu0 %vm1045_vm3, %v1100_v34 }
 0x1ab   : > { %v1932_v23 = vpop.permute.xlu2 %1931 }
 0x1ac   : > { %v1934_v29 = vunpack.i.h.bf16 %v1932_v23  ;;  %v1933_v35 = vunpack.i.l.bf16 %v1932_v23 }
 0x1ae   : > { %v961_v39 = vrot.slane %v1934_v29, 4  ;;  %v905_v40 = vrot.slane %v1933_v35, 4 }
 0x1b3   : > { %v1947_v44 = vpop.permute.xlu2 %1946 }
 0x1b4   : > { %v1949_v37 = vunpack.i.h.bf16 %v1947_v44  ;;  %v1948_v20 = vunpack.i.l.bf16 %v1947_v44 }
 0x1b6   : > { %v973_v56 = vrot.slane %v1949_v37, 4  ;;  %v917_v57 = vrot.slane %v1948_v20, 4 }
 0x1c2   : > { %v1942_v33 = vpop.permute.xlu1 %1941 }
 0x1c3   : > { %v1944_v32 = vunpack.i.h.bf16 %v1942_v33  ;;  %v1943_v12 = vunpack.i.l.bf16 %v1942_v33  ;;  %v1937_v38 = vpop.permute.xlu0 %1936 }
 0x1c4   : > { %v1939_v7 = vunpack.i.h.bf16 %v1937_v38  ;;  %v1938_v41 = vunpack.i.l.bf16 %v1937_v38 }
 0x1c5   : > { %v899_v10 = vrot.slane %v1943_v12, 4  ;;  %v955_v46 = vrot.slane %v1944_v32, 4 }
 0x1c6   : > { %v962_v36 = vsel %vm587_vm2, %v961_v39, %v1939_v7  ;;  %v906_v47 = vsel %vm587_vm2, %v905_v40, %v1938_v41 }
 0x1c7   : > { %v900_v48 = vsel %vm587_vm2, %v899_v10, %v2390_v30  ;;  %v956_v49 = vsel %vm587_vm2, %v955_v46, %v2393_v31  ;;  %v966_v50 = vperm.slane %v962_v36, %v2285_v45  ;;  %v910_v53 = vperm.slane %v906_v47, %v2285_v45 }
 0x1c8   : > { %v904_v55 = vperm.slane %v900_v48, %v2285_v45  ;;  %v960_v59 = vperm.slane %v956_v49, %v2285_v45 }
 0x1c9   : > { %v979_v30 = vrot.slane %v966_v50, 4  ;;  %v923_v1 = vrot.slane %v910_v53, 4 }
 0x1ca   : > { %v1957_v54 = vpop.permute.xlu1 %1956  ;;  %v925_v2 = vrot.slane %v904_v55, 4  ;;  %v981_v3 = vrot.slane %v960_v59, 4 }
 0x1cb   : > { %v1952_v60 = vpop.permute.xlu0 %1951  ;;  %v1959_v52 = vunpack.i.h.bf16 %v1957_v54  ;;  %v1958_v58 = vunpack.i.l.bf16 %v1957_v54  ;;  %v980_v63 = vsel %vm587_vm2, %v979_v30, %v960_v59  ;;  %v924_v6 = vsel %vm587_vm2, %v923_v1, %v904_v55 }
 0x1cc   : > { %v1954_v14 = vunpack.i.h.bf16 %v1952_v60  ;;  %v1953_v15 = vunpack.i.l.bf16 %v1952_v60  ;;  %v926_v8 = vsel %vm587_vm2, %v910_v53, %v925_v2  ;;  %v982_v17 = vsel %vm587_vm2, %v966_v50, %v981_v3 }
 0x1cd   : > { %v967_v0 = vrot.slane %v1959_v52, 4  ;;  %v911_v62 = vrot.slane %v1958_v58, 4  ;;  %v986_v21 = vperm.slane %v980_v63, %v2301_v9  ;;  %v930_v42 = vperm.slane %v924_v6, %v2301_v9 }
 0x1ce   : > { %v974_v31 = vsel %vm587_vm2, %v973_v56, %v1954_v14  ;;  %v918_v61 = vsel %vm587_vm2, %v917_v57, %v1953_v15  ;;  %v934_v18 = vperm.slane %v926_v8, %v2301_v9  ;;  %v990_v27 = vperm.slane %v982_v17, %v2301_v9 }
 0x1cf   : > { %v978_v4 = vperm.slane %v974_v31, %v2285_v45  ;;  %v922_v5 = vperm.slane %v918_v61, %v2285_v45  ;;  %v949_v32 = vrot.slane %v930_v42, 4  ;;  %v1005_v12 = vrot.slane %v986_v21, 4 }
 0x1d0   : > { %v953_v40 = vrot.slane %v934_v18, 4  ;;  %v1009_v53 = vrot.slane %v990_v27, 4 }
 0x1d1   : > { %v991_v19 = vrot.slane %v978_v4, 4  ;;  %v935_v11 = vrot.slane %v922_v5, 4 }
 0x1d2   : > { %v1962_v43 = vpop.permute.xlu1 %1961 }
 0x1d3   : > { %v1964_v13 = vunpack.i.h.bf16 %v1962_v43  ;;  %v1963_v16 = vunpack.i.l.bf16 %v1962_v43 }
 0x1d5   : > { %v912_v22 = vsel %vm587_vm2, %v911_v62, %v1963_v16  ;;  %v968_v51 = vsel %vm587_vm2, %v967_v0, %v1964_v13 }
 0x1d6   : > { %v916_v25 = vperm.slane %v912_v22, %v2285_v45  ;;  %v972_v26 = vperm.slane %v968_v51, %v2285_v45 }
 0x1d8   : > { %v936_v24 = vsel %vm587_vm2, %v935_v11, %v916_v25  ;;  %v937_v28 = vrot.slane %v916_v25, 4  ;;  %v992_v34 = vsel %vm587_vm2, %v991_v19, %v972_v26  ;;  %v993_v23 = vrot.slane %v972_v26, 4 }
 0x1d9   : > { %v942_v29 = vperm.slane %v936_v24, %v2301_v9  ;;  %v998_v35 = vperm.slane %v992_v34, %v2301_v9 }
 0x1da   : > { %v938_v38 = vsel %vm587_vm2, %v922_v5, %v937_v28  ;;  %v994_v39 = vsel %vm587_vm2, %v978_v4, %v993_v23 }
 0x1db   : > { %v2481_v33 = vpop.f32.mrf.mxu1  ;;  %v950_v7 = vsel %vm587_vm2, %v942_v29, %v949_v32  ;;  %v1006_v41 = vsel %vm587_vm2, %v998_v35, %v1005_v12  ;;  %v947_v10 = vrot.slane %v942_v29, 4  ;;  %v1003_v44 = vrot.slane %v998_v35, 4 }
 0x1dc   : > { %v1029_v36 = vpack.c.bf16 %v950_v7, %v950_v7  ;;  %v1030_v47 = vpack.c.bf16 %v1006_v41, %v1006_v41  ;;  %v946_v37 = vperm.slane %v938_v38, %v2301_v9  ;;  %v1002_v20 = vperm.slane %v994_v39, %v2301_v9 }
 0x1dd   : > { %v948_v49 = vsel %vm587_vm2, %v947_v10, %v930_v42  ;;  %v1004_v50 = vsel %vm587_vm2, %v1003_v44, %v986_v21  ;;  %v1174_v17 = vsel %vm1045_vm3, %v2481_v33, -inf }
 0x1de   : > { %v1091_v46 = vpop.f32.mrf.mxu3  ;;  %v1271_v55 = vunpack.c.l.b16 %v1029_v36  ;;  %v1272_v56 = vunpack.c.l.b16 %v1030_v47  ;;  %v1027_v57 = vpack.c.bf16 %v948_v49, %v948_v49  ;;  %v1028_v59 = vpack.c.bf16 %v1004_v50, %v1004_v50  ;;  %v2498_v16 = vpop.f32.mrf.mxu0 }
 0x1df   : > { %v1162_v48 = vsel %vm1045_vm3, %v1091_v46, -inf  ;;  %v954_v52 = vsel %vm587_vm2, %v946_v37, %v953_v40  ;;  %v1010_v58 = vsel %vm587_vm2, %v1002_v20, %v1009_v53  ;;  %v951_v14 = vrot.slane %v946_v37, 4 }
 0x1e0   : > { %1163 = vmax.xlane.f32.xlu2 %v1162_v48  ;;  %v1061_v54 = vpop.f32.mrf.mxu2  ;;  %v1273_v15 = vpack.c.b16 %v1272_v56, %v1271_v55  ;;  %v1243_v30 = vunpack.c.l.b16 %v1027_v57  ;;  %v1244_v1 = vunpack.c.l.b16 %v1028_v59  ;;  %v1033_v2 = vpack.c.bf16 %v954_v52, %v954_v52 }
 0x1e1   : > { %v1156_v60 = vsel %vm1045_vm3, %v1061_v54, -inf  ;;  %v1034_v61 = vpack.c.bf16 %v1010_v58, %v1010_v58  ;;  %v952_v3 = vsel %vm587_vm2, %v951_v14, %v934_v18  ;;  %v1007_v4 = vrot.slane %v1002_v20, 4 }
 0x1e2   : > { %1157 = vmax.xlane.f32.xlu1 %v1156_v60  ;;  %1285 = vmatpush.bf16.msra.mxu3 %v1273_v15  ;;  %v1245_v0 = vpack.c.b16 %v1244_v1, %v1243_v30  ;;  %v1327_v62 = vunpack.c.l.b16 %v1033_v2  ;;  %v1031_v63 = vpack.c.bf16 %v952_v3, %v952_v3 }
 0x1e3   : > { %v1153_v31 = vpop.f32.mrf.mxu1  ;;  %v1328_v6 = vunpack.c.l.b16 %v1034_v61  ;;  %v1008_v43 = vsel %vm587_vm2, %v1007_v4, %v990_v27  ;;  %v1168_v27 = vsel %vm1045_vm3, %v2498_v16, -inf }
 0x1e4   : > { %v1177_v5 = vsel %vm1045_vm3, %v1153_v31, -inf  ;;  %1257 = vmatpush.bf16.msra.mxu2 %v1245_v0  ;;  %v1032_v8 = vpack.c.bf16 %v1008_v43, %v1008_v43  ;;  %v1299_v13 = vunpack.c.l.b16 %v1031_v63 }
 0x1e5   : > { %1178 = vmax.xlane.f32.xlu0 %v1177_v5  ;;  %v1329_v19 = vpack.c.b16 %v1328_v6, %v1327_v62 }
 0x1e6   : > { %v1300_v11 = vunpack.c.l.b16 %v1032_v8  ;;  %v1093_v21 = vpop.f32.mrf.mxu3  ;;  %v1123_v25 = vpop.f32.mrf.mxu0 }
 0x1e7   : > { %1341 = vmatpush.bf16.msrb.mxu1 %v1329_v19  ;;  %v1165_v51 = vsel %vm1045_vm3, %v1093_v21, -inf  ;;  %v1171_v26 = vsel %vm1045_vm3, %v1123_v25, -inf }
 0x1e8   : > { %1175 = vmax.xlane.f32.xlu2 %v1174_v17  ;;  %v1301_v42 = vpack.c.b16 %v1300_v11, %v1299_v13  ;;  %v1063_v22 = vpop.f32.mrf.mxu2 }
 0x1e9   : > { %v1159_v18 = vsel %vm1045_vm3, %v1063_v22, -inf }
 0x1ea   : > { %1313 = vmatpush.bf16.msrb.mxu0 %v1301_v42 }
 0x1ed   : > { %1166 = vmax.xlane.f32.xlu0 %v1165_v51 }
 0x1f0   : > { %1160 = vmax.xlane.f32.xlu2 %v1159_v18 }
 0x1f5   : > { %1172 = vmax.xlane.f32.xlu0 %v1171_v26 }
 0x1f8   : > { %1169 = vmax.xlane.f32.xlu2 %v1168_v27 }
 0x253   : > { %v1164_v24 = vpop.xlane.xlu2 %1163 }
 0x254   : > { %v1182_v28 = vsub.f32 %v1091_v46, %v1164_v24 }
 0x255   : > { %v1158_v34 = vpop.xlane.xlu1 %1157 }
 0x256   : > { %v1192_v23 = vmul.f32 1.442695, %v1182_v28  ;;  %v1180_v29 = vsub.f32 %v1061_v54, %v1158_v34 }
 0x258   : > { %1965 = vpow2.f32 %v1192_v23  ;;  %v1188_v35 = vmul.f32 1.442695, %v1180_v29  ;;  %v1179_v32 = vpop.xlane.xlu0 %1178 }
 0x259   : > { %v1187_v12 = vsub.f32 %v1153_v31, %v1179_v32 }
 0x25a   : > { %1967 = vpow2.f32 %v1188_v35 }
 0x25b   : > { %v1202_v38 = vmul.f32 1.442695, %v1187_v12  ;;  %v1176_v39 = vpop.xlane.xlu2 %1175 }
 0x25c   : > { %v1186_v40 = vsub.f32 %v2481_v33, %v1176_v39 }
 0x25d   : > { %1969 = vpow2.f32 %v1202_v38 }
 0x25e   : > { %v1966_v7 = vpop.eup %1965  ;;  %v1200_v41 = vmul.f32 1.442695, %v1186_v40 }
 0x25f   : > { %v1210_v10 = vsel %vm1045_vm3, %v1966_v7, 0.0  ;;  %v1230_v52 = vpack.c.bf16 %v1966_v7, %v1966_v7 }
 0x260   : > { %v1968_v44 = vpop.eup %1967  ;;  %1971 = vpow2.f32 %v1200_v41  ;;  %v1167_v46 = vpop.xlane.xlu0 %1166  ;;  %1211 = vadd.xlane.f32.xlu0 %v1210_v10 }
 0x261   : > { %v1183_v36 = vsub.f32 %v1093_v21, %v1167_v46  ;;  %v1204_v47 = vsel %vm1045_vm3, %v1968_v44, 0.0  ;;  %v1228_v61 = vpack.c.bf16 %v1968_v44, %v1968_v44  ;;  %v1266_v4 = vunpack.c.l.b16 %v1230_v52 }
 0x262   : > { %1205 = vadd.xlane.f32.xlu2 %v1204_v47 }
 0x263   : > { %v1970_v37 = vpop.eup %1969  ;;  %v1194_v20 = vmul.f32 1.442695, %v1183_v36  ;;  %v1161_v48 = vpop.xlane.xlu2 %1160  ;;  %v1238_v6 = vunpack.c.l.b16 %v1228_v61 }
 0x264   : > { %v1181_v49 = vsub.f32 %v1063_v22, %v1161_v48  ;;  %v1235_v50 = vpack.c.bf16 %v1970_v37, %v1970_v37 }
 0x265   : > { %1973 = vpow2.f32 %v1194_v20 }
 0x266   : > { %v1972_v33 = vpop.eup %1971  ;;  %v1190_v53 = vmul.f32 1.442695, %v1181_v49  ;;  %v1323_v57 = vunpack.c.l.b16 %v1235_v50 }
 0x267   : > { %v1234_v54 = vpack.c.bf16 %v1972_v33, %v1972_v33  ;;  %v1222_v55 = vsel %vm1045_vm3, %v1972_v33, 0.0 }
 0x268   : > { %1975 = vpow2.f32 %v1190_v53  ;;  %v1173_v56 = vpop.xlane.xlu0 %1172  ;;  %1223 = vadd.xlane.f32.xlu1 %v1222_v55 }
 0x269   : > { %v1322_v59 = vunpack.c.l.b16 %v1234_v54  ;;  %v1185_v60 = vsub.f32 %v1123_v25, %v1173_v56  ;;  %v1225_v25 = vsel %vm1045_vm3, %v1970_v37, 0.0 }
 0x26b   : > { %v1974_v58 = vpop.eup %1973  ;;  %v1324_v14 = vpack.c.b16 %v1323_v57, %v1322_v59  ;;  %v1198_v15 = vmul.f32 1.442695, %v1185_v60  ;;  %v1170_v30 = vpop.xlane.xlu2 %1169 }
 0x26c   : > { %v1231_v1 = vpack.c.bf16 %v1974_v58, %v1974_v58  ;;  %v1184_v2 = vsub.f32 %v2498_v16, %v1170_v30  ;;  %v1213_v31 = vsel %vm1045_vm3, %v1974_v58, 0.0 }
 0x26d   : > { %1977 = vpow2.f32 %v1198_v15  ;;  %1214 = vadd.xlane.f32.xlu2 %v1213_v31  ;;  %1778 = vmatmul.msk.bf16.vlgmr.msrb.gmra.mxu1 %vm1045_vm3, %v1324_v14 }
 0x26e   : > { %v1976_v3 = vpop.eup %1975  ;;  %v1267_v5 = vunpack.c.l.b16 %v1231_v1  ;;  %v1196_v0 = vmul.f32 1.442695, %v1184_v2 }
 0x26f   : > { %v1229_v62 = vpack.c.bf16 %v1976_v3, %v1976_v3  ;;  %v1207_v17 = vsel %vm1045_vm3, %v1976_v3, 0.0 }
 0x270   : > { %v1268_v63 = vpack.c.b16 %v1267_v5, %v1266_v4  ;;  %1979 = vpow2.f32 %v1196_v0 }
 0x271   : > { %v1239_v43 = vunpack.c.l.b16 %v1229_v62 }
 0x272   : > { %1776 = vmatmul.msk.bf16.vlgmr.msra.gmra.mxu3 %vm1045_vm3, %v1268_v63 }
 0x273   : > { %v1978_v8 = vpop.eup %1977  ;;  %v1240_v13 = vpack.c.b16 %v1239_v43, %v1238_v6 }
 0x274   : > { %v1219_v16 = vsel %vm1045_vm3, %v1978_v8, 0.0  ;;  %v1233_v19 = vpack.c.bf16 %v1978_v8, %v1978_v8 }
 0x275   : > { %1220 = vadd.xlane.f32.xlu0 %v1219_v16  ;;  %1208 = vadd.xlane.f32.xlu2 %v1207_v17 }
 0x276   : > { %v1980_v11 = vpop.eup %1979  ;;  %1775 = vmatmul.msk.bf16.vlgmr.msra.gmra.mxu2 %vm1045_vm3, %v1240_v13  ;;  %v1295_v22 = vunpack.c.l.b16 %v1233_v19 }
 0x277   : > { %v1232_v21 = vpack.c.bf16 %v1980_v11, %v1980_v11  ;;  %v1216_v42 = vsel %vm1045_vm3, %v1980_v11, 0.0 }
 0x278   : > { %1217 = vadd.xlane.f32.xlu1 %v1216_v42 }
 0x279   : > { %v1294_v51 = vunpack.c.l.b16 %v1232_v21 }
 0x27b   : > { %v1296_v18 = vpack.c.b16 %v1295_v22, %v1294_v51 }
 0x27d   : > { %1777 = vmatmul.msk.bf16.vlgmr.msrb.gmra.mxu0 %vm1045_vm3, %v1296_v18 }
 0x280   : > { %1226 = vadd.xlane.f32.xlu1 %v1225_v25 }
 0x2d3   : > { %v1212_v28 = vpop.xlane.xlu0 %1211 }
 0x2d5   : > { %v1206_v27 = vpop.xlane.xlu2 %1205 }
 0x2db   : > { %v1224_v26 = vpop.xlane.xlu1 %1223 }
 0x2dc   : > { %1981 = vrcp.f32 %v1224_v26 }
 0x2dd   : > { %1983 = vrcp.f32 %v1212_v28 }
 0x2de   : > { %1985 = vrcp.f32 %v1206_v27 }
 0x2e0   : > { %v1215_v34 = vpop.xlane.xlu2 %1214 }
 0x2e2   : > { %v1982_v29 = vpop.eup %1981 }
 0x2e3   : > { %v1984_v12 = vpop.eup %1983 }
 0x2e4   : > { %v1986_v40 = vpop.eup %1985 }
 0x2e8   : > { %v1209_v7 = vpop.xlane.xlu2 %1208  ;;  %v1221_v46 = vpop.xlane.xlu0 %1220 }
 0x2ea   : > { %v1343_v23 = vpop.f32.mrf.mxu1 }
 0x2eb   : > { %v1218_v24 = vpop.xlane.xlu1 %1217  ;;  %v1362_v32 = vmul.f32 %v1982_v29, %v1343_v23 }
 0x2ec   : > { %1987 = vrcp.f32 %v1218_v24 }
 0x2ed   : > { %v1376_v41 = vrot.slane %v1362_v32, 4 }
 0x2f2   : > { %v1988_v44 = vpop.eup %1987  ;;  %v1345_v37 = vpop.f32.mrf.mxu1 }
 0x2f3   : > { %v1227_v35 = vpop.xlane.xlu1 %1226 }
 0x2f4   : > { %1989 = vrcp.f32 %v1227_v35 }
 0x2f5   : > { %v1287_v38 = vpop.f32.mrf.mxu3  ;;  %1991 = vrcp.f32 %v1215_v34 }
 0x2f6   : > { %v1358_v39 = vmul.f32 %v1984_v12, %v1287_v38  ;;  %1993 = vrcp.f32 %v1209_v7 }
 0x2f7   : > { %1995 = vrcp.f32 %v1221_v46 }
 0x2f8   : > { %v1378_v10 = vrot.slane %v1358_v39, 4  ;;  %v1377_v20 = vsel %vm587_vm2, %v1376_v41, %v1358_v39 }
 0x2f9   : > { %v1259_v36 = vpop.f32.mrf.mxu2  ;;  %v1383_v57 = vperm.slane %v1377_v20, %v2285_v45 }
 0x2fa   : > { %v1990_v47 = vpop.eup %1989  ;;  %v1379_v48 = vsel %vm587_vm2, %v1362_v32, %v1378_v10  ;;  %v1356_v49 = vmul.f32 %v1986_v40, %v1259_v36  ;;  %v1315_v50 = vpop.f32.mrf.mxu0 }
 0x2fb   : > { %v1363_v33 = vmul.f32 %v1990_v47, %v1345_v37  ;;  %v2524_v53 = vperm.slane %v1379_v48, %v2285_v45  ;;  %v1360_v54 = vmul.f32 %v1988_v44, %v1315_v50  ;;  %v1992_v56 = vpop.eup %1991  ;;  %v1388_v3 = vrot.slane %v1383_v57, 4 }
 0x2fc   : > { %v1366_v55 = vrot.slane %v1356_v49, 4  ;;  %v1994_v61 = vpop.eup %1993 }
 0x2fd   : > { %v1364_v59 = vrot.slane %v1360_v54, 4  ;;  %v1289_v60 = vpop.f32.mrf.mxu3  ;;  %v1432_v52 = vrot.slane %v1363_v33, 4  ;;  %v1400_v1 = vrot.slane %v2524_v53, 4  ;;  %v1996_v62 = vpop.eup %1995 }
 0x2fe   : > { %v1367_v58 = vsel %vm587_vm2, %v1360_v54, %v1366_v55  ;;  %v1359_v14 = vmul.f32 %v1992_v56, %v1289_v60 }
 0x2ff   : > { %v1365_v15 = vsel %vm587_vm2, %v1364_v59, %v1356_v49  ;;  %v2530_v30 = vperm.slane %v1367_v58, %v2285_v45 }
 0x300   : > { %v1371_v2 = vperm.slane %v1365_v15, %v2285_v45  ;;  %v1434_v31 = vrot.slane %v1359_v14, 4  ;;  %v1433_v4 = vsel %vm587_vm2, %v1432_v52, %v1359_v14 }
 0x301   : > { %v1261_v5 = vpop.f32.mrf.mxu2  ;;  %v1401_v0 = vsel %vm587_vm2, %v1400_v1, %v2530_v30  ;;  %v1439_v11 = vperm.slane %v1433_v4, %v2285_v45  ;;  %v1402_v20 = vrot.slane %v2530_v30, 4 }
 0x302   : > { %v1435_v63 = vsel %vm587_vm2, %v1363_v33, %v1434_v31  ;;  %v1357_v6 = vmul.f32 %v1994_v61, %v1261_v5  ;;  %v1317_v43 = vpop.f32.mrf.mxu0  ;;  %v1407_v8 = vperm.slane %v1401_v0, %v2301_v9  ;;  %v1390_v13 = vrot.slane %v1371_v2, 4 }
 0x303   : > { %v1443_v16 = vperm.slane %v1435_v63, %v2285_v45  ;;  %v1361_v17 = vmul.f32 %v1996_v62, %v1317_v43  ;;  %v1389_v19 = vsel %vm587_vm2, %v1388_v3, %v1371_v2  ;;  %v1444_v34 = vrot.slane %v1439_v11, 4 }
 0x304   : > { %v1422_v21 = vrot.slane %v1357_v6, 4  ;;  %1489 = vrot.lane.b32.xlu0 %v1407_v8, %s2117_s23  ;;  %v1391_v42 = vsel %vm587_vm2, %v1383_v57, %v1390_v13  ;;  %v1395_v22 = vperm.slane %v1389_v19, %v2301_v9  ;;  %v1416_v12 = vrot.slane %v1407_v8, 4 }
 0x305   : > { %v1420_v51 = vrot.slane %v1361_v17, 4  ;;  %v1399_v18 = vperm.slane %v1391_v42, %v2301_v9  ;;  %v1456_v28 = vrot.slane %v1443_v16, 4  ;;  %v1403_v54 = vsel %vm587_vm2, %v2524_v53, %v1402_v20 }
 0x306   : > { %v1423_v25 = vsel %vm587_vm2, %v1361_v17, %v1422_v21  ;;  %v1412_v26 = vrot.slane %v1395_v22, 4  ;;  %v1417_v41 = vsel %vm587_vm2, 0.0, %v1416_v12  ;;  %v1411_v56 = vperm.slane %v1403_v54, %v2301_v9 }
 0x307   : > { %v1421_v27 = vsel %vm587_vm2, %v1420_v51, %v1357_v6  ;;  %v1431_v24 = vperm.slane %v1423_v25, %v2285_v45  ;;  %1481 = vrot.lane.b32.xlu1 %v1399_v18, %s2118_s30  ;;  %v1414_v40 = vrot.slane %v1399_v18, 4 }
 0x308   : > { %v1427_v23 = vperm.slane %v1421_v27, %v2285_v45  ;;  %v1413_v29 = vsel %vm587_vm2, 0.0, %v1412_v26  ;;  %v1418_v59 = vrot.slane %v1411_v56, 4 }
 0x309   : > { %1477 = vrot.lane.b32.xlu2 %v1413_v29, %s2116_s22  ;;  %v1457_v35 = vsel %vm587_vm2, %v1456_v28, %v1431_v24  ;;  %v1458_v10 = vrot.slane %v1431_v24, 4  ;;  %v1415_v44 = vsel %vm587_vm2, 0.0, %v1414_v40 }
 0x30a   : > { %v1463_v32 = vperm.slane %v1457_v35, %v2301_v9  ;;  %v1445_v38 = vsel %vm587_vm2, %v1444_v34, %v1427_v23  ;;  %v1446_v7 = vrot.slane %v1427_v23, 4  ;;  %v1419_v52 = vsel %vm587_vm2, 0.0, %v1418_v59 }
 0x30b   : > { %v1451_v39 = vperm.slane %v1445_v38, %v2301_v9  ;;  %v1459_v37 = vsel %vm587_vm2, %v1443_v16, %v1458_v10 }
 0x30c   : > { %1517 = vrot.lane.b32.xlu0 %v1463_v32, %s2117_s23  ;;  %v1447_v46 = vsel %vm587_vm2, %v1439_v11, %v1446_v7  ;;  %v1467_v48 = vperm.slane %v1459_v37, %v2301_v9  ;;  %v1472_v50 = vrot.slane %v1463_v32, 4 }
 0x30d   : > { %v1468_v45 = vrot.slane %v1451_v39, 4  ;;  %v1455_v47 = vperm.slane %v1447_v46, %v2301_v9 }
 0x30e   : > { %v1473_v55 = vsel %vm587_vm2, 0.0, %v1472_v50  ;;  %v1474_v57 = vrot.slane %v1467_v48, 4 }
 0x30f   : > { %1493 = vrot.lane.b32.xlu1 %v1417_v41, %s2114_s17  ;;  %v1469_v36 = vsel %vm587_vm2, 0.0, %v1468_v45  ;;  %v1470_v49 = vrot.slane %v1455_v47, 4 }
 0x310   : > { %v1475_v60 = vsel %vm587_vm2, 0.0, %v1474_v57 }
 0x311   : > { %1485 = vrot.lane.b32.xlu2 %v1415_v44, %s2115_s21  ;;  %v1471_v33 = vsel %vm587_vm2, 0.0, %v1470_v49 }
 0x314   : > { %1505 = vrot.lane.b32.xlu0 %v1469_v36, %s2116_s22  ;;  %s1560_s22 = scalar_lea.sflag [#allocation4], %s2235_s10 }
 0x317   : > { %1509 = vrot.lane.b32.xlu1 %v1455_v47, %s2118_s30 }
 0x319   : > { %1525 = vrot.lane.b32.xlu2 %v1467_v48, %s2112_s20 }
 0x31c   : > { %1513 = vrot.lane.b32.xlu0 %v1471_v33, %s2115_s21 }
 0x31f   : > { %1521 = vrot.lane.b32.xlu1 %v1473_v55, %s2114_s17  ;;  %s388_s17 = scalar_lea.vmem [#allocation5], %s1763_s18 }
 0x320   : > { %s1575_s27 = sshll.u32 %s388_s17, 4  ;;  %s1576_s27 = int_to_ptr.vmem [resolvable:$true] %s1575_s27 }
 0x321   : > { %1497 = vrot.lane.b32.xlu2 %v1411_v56, %s2112_s20 }
 0x324   : > { %1529 = vrot.lane.b32.xlu0 %v1475_v60, %s2113_s11 }
 0x327   : > { %1501 = vrot.lane.b32.xlu1 %v1419_v52, %s2113_s11  ;;  %s1573_s11 = scalar_lea.hbm %s2634_s7, %s1785_s8 }
 0x328   : > { %s1577_s21 = sshll.u32 %s1573_s11, 4  ;;  %s1578_s21 = int_to_ptr.hbm [resolvable:$true] %s1577_s21 }
 0x329   : > { %s2041_s23 = sshra.s32 %s1578_s21, 4  ;;  %s2042_s23 = int_to_ptr.hbm [resolvable:$true] %s2041_s23 }
 0x32a   : > { %s2043_s30 = scalar_lea.hbm %s2042_s23, 8  ;;  %p2048_p7 = scmp.lt.s32.totalorder %s2042_s23, %s2634_s7 }
 0x32b   : > { %p2044_p4 = scmp.ne.s32.totalorder %s2042_s23, %s2043_s30  ;;  %p2049_p8 = scmp.lt.s32.totalorder %s2047_s12, %s2043_s30 }
 0x32d   : > { %p2045_p5 = pnand %p2044_p4, %p2212_p9  ;;  %p2050_p10 = por %p2049_p8, %p2048_p7 }
 0x32f   : > { %p2046_p6 = pneg %p2045_p5 }
 0x331   : > { %p2051_p13 = pnand %p2050_p10, %p2046_p6 }
 0x363   : > { %v1478_v14 = vpop.permute.xlu2 %1477 }
 0x364   : > { %v1532_v61 = vsel %vm1045_vm3, %v1395_v22, %v1478_v14 }
 0x36b   : > { %v1486_v30 = vpop.permute.xlu2 %1485 }
 0x373   : > { %v1526_v3 = vpop.permute.xlu2 %1525 }
 0x376   : > { %v1490_v53 = vpop.permute.xlu0 %1489 }
 0x379   : > { %v1482_v58 = vpop.permute.xlu1 %1481 }
 0x37a   : > { %v1534_v0 = vsel %vm1533_vm4, %v1532_v61, %v1482_v58 }
 0x37b   : > { %v1536_v6 = vsel %vm1535_vm5, %v1534_v0, %v1486_v30  ;;  %v1498_v21 = vpop.permute.xlu2 %1497 }
 0x37c   : > { %v1538_v13 = vsel %vm1537_vm6, %v1536_v6, %v1490_v53 }
 0x37e   : > { %v1518_v15 = vpop.permute.xlu0 %1517 }
 0x381   : > { %v1494_v9 = vpop.permute.xlu1 %1493 }
 0x382   : > { %v1540_v16 = vsel %vm1539_vm7, %v1538_v13, %v1494_v9 }
 0x383   : > { %v1542_v51 = vsel %vm1541_vm9, %v1540_v16, %v1498_v21 }
 0x386   : > { %v1506_v1 = vpop.permute.xlu0 %1505 }
 0x387   : > { %v1545_v31 = vsel %vm1045_vm3, %v1451_v39, %v1506_v1 }
 0x389   : > { %v1510_v2 = vpop.permute.xlu1 %1509 }
 0x38a   : > { %v1546_v4 = vsel %vm1533_vm4, %v1545_v31, %v1510_v2 }
 0x38e   : > { %v1514_v5 = vpop.permute.xlu0 %1513 }
 0x38f   : > { %v1547_v62 = vsel %vm1535_vm5, %v1546_v4, %v1514_v5 }
 0x390   : > { %v1548_v43 = vsel %vm1537_vm6, %v1547_v62, %v1518_v15 }
 0x391   : > { %v1522_v63 = vpop.permute.xlu1 %1521 }
 0x392   : > { %v1549_v8 = vsel %vm1539_vm7, %v1548_v43, %v1522_v63 }
 0x393   : > { %v1550_v19 = vsel %vm1541_vm9, %v1549_v8, %v1526_v3 }
 0x396   : > { %v1530_v17 = vpop.permute.xlu0 %1529 }
 0x397   : > { %v1551_v11 = vsel %vm1543_vm8, %v1550_v19, %v1530_v17 }
 0x398   : > { %v1554_v42 = vrot.slane %v1551_v11, 4 }
 0x399   : > { %v1502_v22 = vpop.permute.xlu1 %1501 }
 0x39a   : > { %v1544_v18 = vsel %vm1543_vm8, %v1542_v51, %v1502_v22 }
 0x39b   : > { %v1556_v25 = vsel %vm1555_vm10, %v1544_v18, %v1554_v42 }
 0x39c   : > { %1558 = vst [vmem:[%s388_s17] sm:$0xff] %v1556_v25 }
 0x39d   : > { %2054 = shalt.err (!%p2051_p13)
}
 0x39e   : > { %1788 = dma.vmem_to_hbm [thread:$0]  (%p2212_p9), %s1576_s27, 128, %s1578_s21, %s1560_s22  }
 0x39f PF: > { %s1589_s10 = sand.u32 1, %s2089_s24   ;;  %p1795_p0 = pnand %p1758_p12, %p2219_p11 }
 0x3a0   : > { %s1590_s20 = scalar_lea.sflag [#allocation4], %s1589_s10 }
 0x3a1   : > { %p1796_p1 = pneg %p1795_p0 }
 0x3a3   : > { %2084 = dma.done.wait (%p1796_p1), %s1590_s20, 128  }
 0x3a4   : > { %2086 = vsyncadd (%p1796_p1), %s1590_s20, 4294967168  ;;  %s23_s29 = sadd.s32 1, %s2109_s29   ;;  %s2639_s24 = smov %s2093_s25 }
 0x3a5   : > { %p20_p2 = scmp.ge.s32.totalorder %s23_s29, 4   ;;  %s2640_s25 = smov %s2097_s26 }
 0x3a6   : > { %s2641_s26 = smov %s2217_s15  ;;  %s2642_s27 = smov %s2105_s28 }
 0x3a7   : > { %s2643_s28 = smov %s2645_s9  ;;  %22 = sbr.rel (!%p20_p2) target bundleno = 6 (0x6), region = 111 }
 0x3ac   :  { %1596 = vsyncpa [#allocation3], 1 }
 0x3ad   :  { %1598 = vsyncpa [#allocation3 + $0x1], 1 }
 0x3ae   :  { %1599 = vsyncpa [#allocation4], 1 }
 0x3af   :  { %1601 = vsyncpa [#allocation4 + $0x1], 1 }

// kernel: tpu_custom_call.1
= control target key start
LH: loop header
LB: loop body
LE: loop exit
PB: predicated region body
PF: predicated region fallthrough
CT: control target
= control target key end

     0   :  { %12 = vsyncpa [#allocation3], 0  ;;  %s3185_s0 = inlined_call_operand.hbm [shape: f32[2,4,16,16], index: 0, kind: input, shape index: {}]   ;;  %s3186_s1 = inlined_call_operand.vmem [shape: f32[4,4], index: 1, kind: input, shape index: {}]   ;;  %s3187_s2 = inlined_call_operand.vmem [shape: f32[4,4], index: 2, kind: input, shape index: {}]   ;;  %s3188_s3 = inlined_call_operand.vmem [shape: f32[4,4], index: 3, kind: input, shape index: {}]   ;;  %s3189_s4 = inlined_call_operand.vmem [shape: f32[4,1], index: 4, kind: input, shape index: {}]   ;;  %s3190_s5 = inlined_call_operand.vmem [shape: f32[4,1], index: 5, kind: input, shape index: {}]   ;;  %s3191_s6 = inlined_call_operand.vmem [shape: f32[4,1], index: 6, kind: input, shape index: {}]   ;;  %s3192_s7 = inlined_call_operand.hbm [shape: f32[2,4,16,16], index: 7, kind: output, shape index: {}]  }
   0x1   :  { %14 = vsyncpa [#allocation3 + $0x1], 0 }
   0x2   :  { %15 = vsyncpa [#allocation4], 0 }
   0x3   :  { %17 = vsyncpa [#allocation4 + $0x1], 0  ;;  %s2559_s24 = smov 0   ;;  %s2561_s25 = smov 0  }
   0x4   :  { %s2563_s26 = smov 0   ;;  %s2565_s27 = smov 0  }
   0x5   :  { %s2567_s28 = smov 0   ;;  %s2569_s29 = smov 0  }
   0x6 LB: > { %3195 = sst [smem:[#allocation8_spill]] %s2499_s28  ;;  %s2138_s30 = sadd.s32 4294967295, %s2503_s29   ;;  %s2503_s29 = sphi %s2569_s29, %s23_s29   ;;  %s2499_s28 = sphi %s2567_s28, %s3202_s28   ;;  %s2495_s27 = sphi %s2565_s27, %s3201_s27   ;;  %s2491_s26 = sphi %s2563_s26, %s3205_s26   ;;  %s2487_s25 = sphi %s2561_s25, %s3204_s25   ;;  %s2483_s24 = sphi %s2559_s24, %s3203_s24  }
   0x7   : > { %s2139_s8 = sadd.s32 4294967294, %s2503_s29   ;;  %s35_s9 = sadd.s32 1, %s2499_s28 }
   0x8   : > { %s42_s10 = sadd.s32 1, %s2491_s26  ;;  %p37_p0 = scmp.ge.s32.totalorder %s35_s9, 2 }
   0x9   : > { %p49_p1 = scmp.ne.s32.totalorder %s2491_s26, %s2487_s25  ;;  %p50_p2 = scmp.eq.s32.totalorder %s2503_s29, 0 }
   0xa   : > { %p55_p3 = scmp.ne.s32.totalorder %s2487_s25, %s2483_s24  ;;  %s3207_s9 = smov (%p37_p0, %s35_s9), 0 }
   0xb   : > { %3196 = sst [smem:[#allocation9_spill]] %s3207_s9  ;;  %p2600_p4 = por %p50_p2, %p49_p1 }
   0xc   : > { %p56_p5 = scmp.eq.s32.totalorder %s2138_s30, 0  ;;  %s39_s12 = ssub.s32 %s2499_s28, %s3207_s9 }
   0xd   : > { %p237_p6 = scmp.eq.s32.totalorder %s2138_s30, 1  ;;  %p40_p7 = scmp.eq.s32.totalorder %s39_s12, 0 }
   0xe   : > { %p2606_p8 = por %p56_p5, %p55_p3  ;;  %p243_p10 = scmp.eq.s32.totalorder %s2139_s8, 1 }
   0xf   : > { %p2610_p9 = por %p237_p6, %p49_p1  ;;  %p2147_p12 = scmp.ge.s32.totalorder %s2503_s29, 2 }
  0x10   : > { %s2615_s15 = scalar_select %p40_p7, %s2491_s26, %s42_s10  }
  0x11   : > { %p2617_p11 = por %p243_p10, %p55_p3  ;;  %p2187_p13 = scmp.lt.s32.totalorder %s2503_s29, 2 }
  0x12   : > { %s305_s17 = sand.u32 1, %s2491_s26   ;;  %s2173_s19 = sshll.u32 %s2499_s28, 6 }
  0x13   : > { %s2148_s18 = sshll.u32 %s305_s17, 6  ;;  %s314_s22 = scalar_lea.hbm %s3185_s0, %s2173_s19 }
  0x14   : > { %s309_s23 = scalar_lea.vmem [#allocation2], %s2148_s18  ;;  %s315_s12 = sshll.u32 %s314_s22, 4  ;;  %s316_s12 = int_to_ptr.hbm [resolvable:$true] %s315_s12 }
  0x15   : > { %s317_s30 = sshll.u32 %s309_s23, 4  ;;  %p2180_p0 = pnand %p2187_p13, %p2600_p4  ;;  %s318_s30 = int_to_ptr.vmem [resolvable:$true] %s317_s30 }
  0x16   : > { %p2151_p1 = scmp.ge.s32.totalorder %s2503_s29, 1  ;;  %s306_s8 = scalar_lea.sflag [#allocation3], %s305_s17 }
  0x17   : > { %s2505_s10 = smov 128   ;;  %s2506_s9 = smov 8  }
  0x18   : > { %2182 = dma.hbm_to_vmem [thread:$0]  (!%p2180_p0), %s316_s12, 1024, %s318_s30, %s306_s8, %s2505_s10, %s2505_s10, %s2506_s9  }
  0x19   : > { %p325_p2 = scmp.lt.s32.totalorder %s2503_s29, 3 }
  0x1b   : > { %p326_p3 = pnand %p2151_p1, %p325_p2 }
  0x1c   : > { %s2633_s28 = sand.u32 (!%p326_p3), 1, %s2487_s25  }
  0x1d   : > { %329 = sbr.rel (%p326_p3) target bundleno = 1031 (0x407), region = 48  ;;  %s2152_s18 = sshll.u32 (!%p326_p3), %s2633_s28, 6 }
  0x1e   : > { %s332_s19 = scalar_lea.sflag (!%p326_p3), [#allocation3], %s2633_s28  ;;  %s335_s11 = scalar_lea.vmem (!%p326_p3), [#allocation2], %s2152_s18 }
  0x22   : > { %2474 = dma.done.wait (%p2606_p8), %s332_s19, 1024  }
  0x23   : > { %2476 = vsyncadd (%p2606_p8), %s332_s19, 4294966272  ;;  %v2507_v0 = vmov 1983009808   ;;  %v2508_v2 = vmov 1934713408   ;;  %v418_v4 = vld [vmem:[%s335_s11 + $0x8] sm:$0xff] }
  0x24   : > { %v486_v1 = vunpack.c.l.s4 %v2507_v0  ;;  %v500_v3 = vunpack.c.l.s4 %v2508_v2  ;;  %v420_v5 = vld [vmem:[%s335_s11 + $0x18] sm:$0xff]  ;;  %v422_v6 = vld [vmem:[%s335_s11 + $0x28] sm:$0xff]  ;;  %vm495_vm0 = vcmask 1047556   ;;  %v426_v8 = vpack.c.bf16 %v418_v4, %v418_v4  ;;  %v417_v12 = vld [vmem:[%s335_s11] sm:$0xff]  ;;  %s2509_s9 = smov 64   ;;  %s2510_s13 = smov 80  }
  0x25   : > { %v424_v7 = vld [vmem:[%s335_s11 + $0x38] sm:$0xff]  ;;  %v428_v9 = vpack.c.bf16 %v420_v5, %v420_v5  ;;  %v430_v10 = vpack.c.bf16 %v422_v6, %v422_v6  ;;  %v419_v13 = vld [vmem:[%s335_s11 + $0x10] sm:$0xff]  ;;  %v421_v16 = vld [vmem:[%s335_s11 + $0x20] sm:$0xff]  ;;  %v425_v18 = vpack.c.bf16 %v417_v12, %v417_v12  ;;  %s2512_s17 = smov 32   ;;  %s2513_s20 = smov 16   ;;  %vm659_vm1 = vcmask 130048  }
  0x26   : > { %v2643_v11 = vunpack.c.0.s8 %v486_v1  ;;  %v432_v14 = vpack.c.bf16 %v424_v7, %v424_v7  ;;  %v2645_v15 = vunpack.c.0.s8 %v500_v3  ;;  %v423_v17 = vld [vmem:[%s335_s11 + $0x30] sm:$0xff]  ;;  %v427_v19 = vpack.c.bf16 %v419_v13, %v419_v13  ;;  %s2514_s21 = smov 48   ;;  %s2515_s22 = smov 96  }
  0x27   : > { %v474_v20 = vpack.i.b16 %v428_v9, %v426_v8  ;;  %v481_v21 = vshrl.u32 %v430_v10, 16  ;;  %v429_v22 = vpack.c.bf16 %v421_v16, %v421_v16  ;;  %v431_v23 = vpack.c.bf16 %v423_v17, %v423_v17  ;;  %s2516_s12 = smov 112   ;;  %s2441_s10 = scalar_lea.hbm %s3192_s7, 128 }
  0x28   : > { %v480_v24 = vpack.i.b16 %v432_v14, %v430_v10  ;;  %v482_v25 = vshrl.u32 %v432_v14, 16  ;;  %v462_v26 = vpack.i.b16 %v427_v19, %v425_v18  ;;  %v463_v27 = vshrl.u32 %v425_v18, 16 }
  0x29   : > { %v541_v28 = vperm.slane %v474_v20, %v2643_v11  ;;  %v468_v29 = vpack.i.b16 %v431_v23, %v429_v22  ;;  %v469_v30 = vshrl.u32 %v429_v22, 16  ;;  %v470_v31 = vshrl.u32 %v431_v23, 16 }
  0x2a   : > { %v546_v32 = vperm.slane %v480_v24, %v2643_v11  ;;  %v488_v33 = vperm.slane %v462_v26, %v2643_v11  ;;  %v464_v34 = vshrl.u32 %v427_v19, 16  ;;  %v475_v35 = vshrl.u32 %v426_v8, 16 }
  0x2b   : > { %v549_v36 = vrot.slane %v541_v28, 4  ;;  %v493_v37 = vperm.slane %v468_v29, %v2643_v11  ;;  %v471_v38 = vpack.i.b16 %v470_v31, %v469_v30  ;;  %v476_v39 = vshrl.u32 %v428_v9, 16 }
  0x2c   : > { %v497_v40 = vrot.slane %v488_v33, 4  ;;  %v465_v41 = vpack.i.b16 %v464_v34, %v463_v27  ;;  %v483_v42 = vpack.i.b16 %v482_v25, %v481_v21  ;;  %v547_v51 = vrot.slane %v546_v32, 4 }
  0x2d   : > { %v550_v43 = vsel %vm495_vm0, %v546_v32, %v549_v36  ;;  %v494_v44 = vrot.slane %v493_v37, 4  ;;  %v520_v45 = vperm.slane %v471_v38, %v2643_v11  ;;  %v477_v46 = vpack.i.b16 %v476_v39, %v475_v35 }
  0x2e   : > { %v2654_v47 = vperm.slane %v550_v43, %v2645_v15  ;;  %v498_v48 = vsel %vm495_vm0, %v493_v37, %v497_v40  ;;  %v515_v49 = vperm.slane %v465_v41, %v2643_v11  ;;  %v572_v50 = vperm.slane %v483_v42, %v2643_v11 }
  0x2f   : > { %v506_v52 = vperm.slane %v498_v48, %v2645_v15  ;;  %v521_v53 = vrot.slane %v520_v45, 4  ;;  %v496_v54 = vsel %vm495_vm0, %v494_v44, %v488_v33  ;;  %v567_v58 = vperm.slane %v477_v46, %v2643_v11 }
  0x30   : > { %v640_v55 = vunpack.c.l.b16 %v2654_v47  ;;  %v2663_v56 = vperm.slane %v496_v54, %v2645_v15  ;;  %v523_v57 = vrot.slane %v515_v49, 4  ;;  %v573_v61 = vrot.slane %v572_v50, 4 }
  0x31   : > { %v605_v59 = vunpack.c.l.b16 %v506_v52  ;;  %v522_v60 = vsel %vm495_vm0, %v521_v53, %v515_v49  ;;  %v548_v4 = vsel %vm495_vm0, %v547_v51, %v541_v28  ;;  %v575_v22 = vrot.slane %v567_v58, 4 }
  0x32   : > { %v641_v62 = vpack.c.b16 %v640_v55, %v640_v55  ;;  %v528_v63 = vperm.slane %v522_v60, %v2645_v15  ;;  %v507_v0 = vrot.slane %v2663_v56, 4  ;;  %v524_v1 = vsel %vm495_vm0, %v520_v45, %v523_v57 }
  0x33   : > { %v606_v2 = vpack.c.b16 %v605_v59, %v605_v59  ;;  %v532_v3 = vperm.slane %v524_v1, %v2645_v15  ;;  %v574_v6 = vsel %vm495_vm0, %v573_v61, %v567_v58  ;;  %v2676_v7 = vperm.slane %v548_v4, %v2645_v15  ;;  %v435_v61 = vld [vmem:[%s3189_s4] sm:$0xf] }
  0x34   : > { %642 = vrot.lane.b32.xlu1 %v641_v62, %s2509_s9  ;;  %v508_v5 = vsel %vm495_vm0, 0, %v507_v0  ;;  %v590_v8 = vunpack.c.l.b16 %v528_v63  ;;  %v533_v12 = vrot.slane %v528_v63, 4  ;;  %v580_v18 = vperm.slane %v574_v6, %v2645_v15 }
  0x35   : > { %607 = vrot.lane.b32.xlu0 %v606_v2, %s2509_s9  ;;  %v595_v9 = vunpack.c.l.b16 %v508_v5  ;;  %v610_v10 = vunpack.c.l.b16 %v532_v3  ;;  %v559_v13 = vrot.slane %v2676_v7, 4  ;;  %v2511_v24 = vmov 0  }
  0x36   : > { %v534_v16 = vsel %vm495_vm0, 0, %v533_v12  ;;  %v591_v19 = vpack.c.b16 %v590_v8, %v590_v8  ;;  %v585_v23 = vrot.slane %v580_v18, 4  ;;  %2253 = vset.pattern.permute.xlu1 %v2511_v24  ;;  %2252 = vset.pattern.permute.xlu0 %v2511_v24  ;;  %v509_v26 = vrot.slane %v506_v52, 4  ;;  %v981_v52 = vld [vmem:[%s3190_s5] sm:$0xf] }
  0x37   : > { %v611_v14 = vpack.c.b16 %v610_v10, %v610_v10  ;;  %v596_v17 = vpack.c.b16 %v595_v9, %v595_v9  ;;  %v560_v20 = vsel %vm495_vm0, 0, %v559_v13  ;;  %v600_v21 = vunpack.c.l.b16 %v534_v16  ;;  %2251 = vset.pattern.permute.xlu2 %v2511_v24 }
  0x38   : > { %v630_v25 = vunpack.c.l.b16 %v560_v20  ;;  %v625_v27 = vunpack.c.l.b16 %v580_v18  ;;  %v576_v29 = vsel %vm495_vm0, %v572_v50, %v575_v22  ;;  %v586_v30 = vsel %vm495_vm0, 0, %v585_v23 }
  0x39   : > { %612 = vrot.lane.b32.xlu2 %v611_v14, %s2510_s13  ;;  %v601_v28 = vpack.c.b16 %v600_v21, %v600_v21  ;;  %v584_v33 = vperm.slane %v576_v29, %v2645_v15  ;;  %v510_v34 = vsel %vm495_vm0, 0, %v509_v26  ;;  %v635_v35 = vunpack.c.l.b16 %v586_v30  ;;  %v979_v29 = vld [vmem:[%s3187_s2] sm:$0xf] }
  0x3a   : > { %v631_v31 = vpack.c.b16 %v630_v25, %v630_v25  ;;  %v626_v32 = vpack.c.b16 %v625_v27, %v625_v27  ;;  %v561_v36 = vrot.slane %v2654_v47, 4  ;;  %v615_v37 = vunpack.c.l.b16 %v510_v34 }
  0x3b   : > { %v645_v38 = vunpack.c.l.b16 %v584_v33  ;;  %v636_v39 = vpack.c.b16 %v635_v35, %v635_v35  ;;  %v587_v40 = vrot.slane %v584_v33, 4  ;;  %v535_v41 = vrot.slane %v532_v3, 4 }
  0x3c   : > { %597 = vrot.lane.b32.xlu1 %v596_v17, %s2512_s17  ;;  %v562_v42 = vsel %vm495_vm0, 0, %v561_v36  ;;  %v616_v43 = vpack.c.b16 %v615_v37, %v615_v37  ;;  %v985_v54 = vrot.slane %v981_v52, 3  ;;  %v984_v55 = vrot.slane %v981_v52, 2 }
  0x3d   : > { %592 = vrot.lane.b32.xlu0 %v591_v19, %s2513_s20  ;;  %v646_v44 = vpack.c.b16 %v645_v38, %v645_v38  ;;  %v588_v45 = vsel %vm495_vm0, 0, %v587_v40  ;;  %v650_v46 = vunpack.c.l.b16 %v562_v42  ;;  %v536_v47 = vsel %vm495_vm0, 0, %v535_v41  ;;  %v433_v41 = vld [vmem:[%s3186_s1] sm:$0xf] }
  0x3e   : > { %v655_v48 = vunpack.c.l.b16 %v588_v45  ;;  %v620_v49 = vunpack.c.l.b16 %v536_v47  ;;  %v983_v57 = vrot.slane %v981_v52, 1  ;;  %v989_v58 = vperm.slane %v985_v54, 0 }
  0x3f   : > { %v651_v50 = vpack.c.b16 %v650_v46, %v650_v46  ;;  %v988_v59 = vperm.slane %v984_v55, 0  ;;  %v439_v62 = vrot.slane %v435_v61, 3  ;;  %v438_v63 = vrot.slane %v435_v61, 2 }
  0x40   : > { %v656_v51 = vpack.c.b16 %v655_v48, %v655_v48  ;;  %v621_v53 = vpack.c.b16 %v620_v49, %v620_v49  ;;  %v987_v60 = vperm.slane %v983_v57, 0  ;;  %v986_v0 = vperm.slane %v981_v52, 0 }
  0x41   : > { %602 = vrot.lane.b32.xlu2 %v601_v28, %s2514_s21  ;;  %v443_v1 = vperm.slane %v439_v62, 0  ;;  %v442_v2 = vperm.slane %v438_v63, 0  ;;  %v437_v3 = vrot.slane %v435_v61, 1  ;;  %v440_v5 = vperm.slane %v435_v61, 0 }
  0x42   : > { %vm663_vm2 = vcmask 261120   ;;  %vm666_vm3 = vcmask 392192   ;;  %vm669_vm4 = vcmask 523264   ;;  %vm672_vm5 = vcmask 654336  }
  0x43   : > { %v441_v4 = vperm.slane %v437_v3, 0  ;;  %vm675_vm6 = vcmask 785408   ;;  %vm678_vm7 = vcmask 916480   ;;  %vm792_vm8 = vcmask 1041408  }
  0x44   : > { %632 = vrot.lane.b32.xlu1 %v631_v31, %s2512_s17  ;;  %v980_v38 = vpack.c.bf16 %v979_v29, %v979_v29  ;;  %vm788_vm9 = vcmask 31744  }
  0x45   : > { %627 = vrot.lane.b32.xlu0 %v626_v32, %s2513_s20 }
  0x49   : > { %637 = vrot.lane.b32.xlu2 %v636_v39, %s2514_s21 }
  0x4c   : > { %617 = vrot.lane.b32.xlu1 %v616_v43, %s2515_s22  ;;  %v434_v43 = vpack.c.bf16 %v433_v41, %v433_v41 }
  0x4d   : > { %647 = vrot.lane.b32.xlu0 %v646_v44, %s2510_s13 }
  0x51   : > { %652 = vrot.lane.b32.xlu2 %v651_v50, %s2515_s22 }
  0x54   : > { %657 = vrot.lane.b32.xlu1 %v656_v51, %s2516_s12 }
  0x55   : > { %622 = vrot.lane.b32.xlu0 %v621_v53, %s2516_s12 }
  0x59   : > { %1003 = vperm.xlu2 %2251, %v989_v58  }
  0x5c   : > { %999 = vperm.xlu1 %2253, %v988_v59  }
  0x5d   : > { %995 = vperm.xlu0 %2252, %v987_v60  }
  0x61   : > { %991 = vperm.xlu2 %2251, %v986_v0  }
  0x64   : > { %457 = vperm.xlu1 %2253, %v443_v1  }
  0x65   : > { %453 = vperm.xlu0 %2252, %v442_v2  }
  0x69   : > { %449 = vperm.xlu2 %2251, %v441_v4  }
  0x6c   : > { %445 = vperm.xlu1 %2253, %v440_v5  }
  0x93   : > { %v613_v6 = vpop.permute.xlu2 %612 }
  0x9b   : > { %v603_v8 = vpop.permute.xlu2 %602 }
  0xa3   : > { %v638_v12 = vpop.permute.xlu2 %637 }
  0xa6   : > { %v643_v9 = vpop.permute.xlu1 %642 }
  0xa7   : > { %v608_v10 = vpop.permute.xlu0 %607 }
  0xab   : > { %v653_v16 = vpop.permute.xlu2 %652 }
  0xae   : > { %v598_v13 = vpop.permute.xlu1 %597 }
  0xaf   : > { %v593_v14 = vpop.permute.xlu0 %592 }
  0xb0   : > { %v662_v20 = vsel %vm659_vm1, %v2663_v56, %v593_v14 }
  0xb1   : > { %v665_v22 = vsel %vm663_vm2, %v662_v20, %v598_v13 }
  0xb2   : > { %v668_v26 = vsel %vm666_vm3, %v665_v22, %v603_v8 }
  0xb3   : > { %v1004_v27 = vpop.permute.xlu2 %1003  ;;  %v671_v56 = vsel %vm669_vm4, %v668_v26, %v608_v10 }
  0xb4   : > { %v674_v30 = vsel %vm672_vm5, %v671_v56, %v613_v6  ;;  %v1018_v44 = vrot.slane %v1004_v27, 4 }
  0xb6   : > { %v633_v17 = vpop.permute.xlu1 %632 }
  0xb7   : > { %v628_v18 = vpop.permute.xlu0 %627 }
  0xb8   : > { %v683_v19 = vsel %vm659_vm1, %v2676_v7, %v628_v18 }
  0xb9   : > { %v685_v21 = vsel %vm663_vm2, %v683_v19, %v633_v17 }
  0xba   : > { %v687_v24 = vsel %vm666_vm3, %v685_v21, %v638_v12 }
  0xbb   : > { %v689_v7 = vsel %vm669_vm4, %v687_v24, %v643_v9  ;;  %v992_v40 = vpop.permute.xlu2 %991 }
  0xbc   : > { %v1008_v42 = vrot.slane %v992_v40, 4 }
  0xbe   : > { %v618_v23 = vpop.permute.xlu1 %617 }
  0xbf   : > { %v648_v25 = vpop.permute.xlu0 %647  ;;  %v677_v33 = vsel %vm675_vm6, %v674_v30, %v618_v23 }
  0xc0   : > { %v691_v28 = vsel %vm672_vm5, %v689_v7, %v648_v25 }
  0xc1   : > { %v693_v31 = vsel %vm675_vm6, %v691_v28, %v653_v16 }
  0xc3   : > { %v450_v62 = vpop.permute.xlu2 %449 }
  0xc4   : > { %v711_v5 = vrot.slane %v450_v62, 4 }
  0xc6   : > { %v658_v32 = vpop.permute.xlu1 %657 }
  0xc7   : > { %v623_v34 = vpop.permute.xlu0 %622  ;;  %v695_v35 = vsel %vm678_vm7, %v693_v31, %v658_v32 }
  0xc8   : > { %v680_v36 = vsel %vm678_vm7, %v677_v33, %v623_v34  ;;  %v795_v37 = vsel %vm792_vm8, %v695_v35, 0 }
  0xc9   : > { %v793_v39 = vsel %vm792_vm8, %v680_v36, 0  ;;  %817 = vmatpush.bf16.msra.mxu1 %v795_v37  ;;  %1120 = vmatpush.bf16.msra.mxu3 %v795_v37 }
  0xca   : > { %804 = vmatpush.bf16.msra.mxu0 %v793_v39  ;;  %1107 = vmatpush.bf16.msra.mxu2 %v793_v39 }
  0xcc   : > { %2157 = vmatmul.msk.bf16.vlgmr.msra.gmra.mxu3 %vm788_vm9, %v980_v38  ;;  %2155 = vmatmul.msk.bf16.vlgmr.msra.gmra.mxu1 %vm788_vm9, %v434_v43 }
  0xcd   : > { %1423 = vmatpush.bf16.msrb.mxu1 %v795_v37  ;;  %2156 = vmatmul.msk.bf16.vlgmr.msra.gmra.mxu2 %vm788_vm9, %v980_v38 }
  0xce   : > { %1410 = vmatpush.bf16.msrb.mxu0 %v793_v39  ;;  %v1000_v45 = vpop.permute.xlu1 %999 }
  0xcf   : > { %2154 = vmatmul.msk.bf16.vlgmr.msra.gmra.mxu0 %vm788_vm9, %v434_v43  ;;  %v996_v46 = vpop.permute.xlu0 %995  ;;  %v1006_v47 = vrot.slane %v1000_v45, 4  ;;  %v1009_v48 = vsel %vm495_vm0, %v1000_v45, %v1008_v42 }
  0xd0   : > { %v1020_v49 = vrot.slane %v996_v46, 4  ;;  %v1017_v50 = vperm.slane %v1009_v48, %v2643_v11  ;;  %v1019_v51 = vsel %vm495_vm0, %v1018_v44, %v996_v46 }
  0xd1   : > { %v1007_v52 = vsel %vm495_vm0, %v1006_v47, %v992_v40  ;;  %v1025_v58 = vperm.slane %v1019_v51, %v2643_v11 }
  0xd2   : > { %v1021_v53 = vsel %vm495_vm0, %v1004_v27, %v1020_v49  ;;  %v1013_v54 = vperm.slane %v1007_v52, %v2643_v11  ;;  %v1044_v55 = vrot.slane %v1017_v50, 4 }
  0xd3   : > { %v1029_v57 = vperm.slane %v1021_v53, %v2643_v11  ;;  %v1030_v6 = vrot.slane %v1025_v58, 4 }
  0xd4   : > { %v1032_v59 = vrot.slane %v1013_v54, 4 }
  0xd5   : > { %v1042_v60 = vrot.slane %v1029_v57, 4  ;;  %v1045_v61 = vsel %vm495_vm0, %v1029_v57, %v1044_v55  ;;  %v1031_v18 = vsel %vm495_vm0, %v1030_v6, %v1013_v54 }
  0xd6   : > { %v458_v63 = vpop.permute.xlu1 %457  ;;  %v1053_v0 = vperm.slane %v1045_v61, %v2645_v15  ;;  %v1033_v1 = vsel %vm495_vm0, %v1025_v58, %v1032_v59  ;;  %v1037_v26 = vperm.slane %v1031_v18, %v2645_v15 }
  0xd7   : > { %v1043_v2 = vsel %vm495_vm0, %v1042_v60, %v1017_v50  ;;  %v1041_v3 = vperm.slane %v1033_v1, %v2645_v15  ;;  %v454_v8 = vpop.permute.xlu0 %453  ;;  %v709_v9 = vrot.slane %v458_v63, 4  ;;  %v712_v10 = vsel %vm495_vm0, %v458_v63, %v711_v5 }
  0xd8   : > { %1083 = vrot.lane.b32.xlu1 %v1053_v0, %s2515_s22  ;;  %v1049_v4 = vperm.slane %v1043_v2, %v2645_v15  ;;  %v696_v13 = vrot.slane %v454_v8, 4  ;;  %v1060_v14 = vrot.slane %v1053_v0, 4  ;;  %v720_v16 = vperm.slane %v712_v10, %v2643_v11 }
  0xd9   : > { %1067 = vrot.lane.b32.xlu0 %v1041_v3, %s2512_s17  ;;  %v1056_v12 = vrot.slane %v1041_v3, 4  ;;  %v710_v19 = vsel %vm495_vm0, %v709_v9, %v450_v62  ;;  %v1054_v33 = vrot.slane %v1037_v26, 4 }
  0xda   : > { %1075 = vrot.lane.b32.xlu2 %v1049_v4, %s2509_s9  ;;  %v1061_v25 = vsel %vm495_vm0, 0.0, %v1060_v14  ;;  %v716_v27 = vperm.slane %v710_v19, %v2643_v11  ;;  %v733_v7 = vrot.slane %v720_v16, 4  ;;  %v1058_v36 = vrot.slane %v1049_v4, 4 }
  0xdb   : > { %v1057_v22 = vsel %vm495_vm0, 0.0, %v1056_v12  ;;  %v1055_v35 = vsel %vm495_vm0, 0.0, %v1054_v33 }
  0xdc   : > { %v721_v34 = vrot.slane %v716_v27, 4  ;;  %v1059_v40 = vsel %vm495_vm0, 0.0, %v1058_v36 }
  0xde   : > { %v446_v17 = vpop.permute.xlu1 %445 }
  0xdf   : > { %v698_v20 = vsel %vm495_vm0, %v696_v13, %v446_v17  ;;  %v699_v21 = vrot.slane %v446_v17, 4 }
  0xe0   : > { %v704_v23 = vperm.slane %v698_v20, %v2643_v11  ;;  %1071 = vrot.lane.b32.xlu1 %v1057_v22, %s2514_s21 }
  0xe1   : > { %v700_v24 = vsel %vm495_vm0, %v454_v8, %v699_v21 }
  0xe2   : > { %v708_v28 = vperm.slane %v700_v24, %v2643_v11  ;;  %v723_v56 = vrot.slane %v704_v23, 4  ;;  %1087 = vrot.lane.b32.xlu2 %v1061_v25, %s2516_s12  ;;  %v722_v38 = vsel %vm495_vm0, %v721_v34, %v704_v23 }
  0xe3   : > { %v728_v41 = vperm.slane %v722_v38, %v2645_v15 }
  0xe4   : > { %v734_v29 = vsel %vm495_vm0, %v733_v7, %v708_v28  ;;  %v724_v30 = vsel %vm495_vm0, %v716_v27, %v723_v56  ;;  %v735_v42 = vrot.slane %v708_v28, 4 }
  0xe5   : > { %v740_v31 = vperm.slane %v734_v29, %v2645_v15  ;;  %v732_v32 = vperm.slane %v724_v30, %v2645_v15  ;;  %v745_v45 = vrot.slane %v728_v41, 4 }
  0xe6   : > { %v736_v46 = vsel %vm495_vm0, %v720_v16, %v735_v42 }
  0xe7   : > { %766 = vrot.lane.b32.xlu0 %v740_v31, %s2509_s9  ;;  %v749_v37 = vrot.slane %v740_v31, 4  ;;  %v747_v39 = vrot.slane %v732_v32, 4  ;;  %v746_v47 = vsel %vm495_vm0, 0.0, %v745_v45  ;;  %v744_v48 = vperm.slane %v736_v46, %v2645_v15  ;;  %v1284_v31 = vld [vmem:[%s3191_s6] sm:$0xf] }
  0xe8   : > { %758 = vrot.lane.b32.xlu1 %v732_v32, %s2512_s17  ;;  %v1288_v32 = vrot.slane %v1284_v31, 3  ;;  %v1286_v34 = vrot.slane %v1284_v31, 1 }
  0xe9   : > { %v750_v43 = vsel %vm495_vm0, 0.0, %v749_v37  ;;  %v748_v44 = vsel %vm495_vm0, 0.0, %v747_v39  ;;  %v751_v49 = vrot.slane %v744_v48, 4  ;;  %v1289_v37 = vperm.slane %v1284_v31, 0 }
  0xea   : > { %1063 = vrot.lane.b32.xlu2 %v1055_v35, %s2513_s20  ;;  %v1292_v33 = vperm.slane %v1288_v32, 0  ;;  %v1287_v35 = vrot.slane %v1284_v31, 2  ;;  %v1290_v36 = vperm.slane %v1286_v34, 0 }
  0xeb   : > { %v752_v50 = vsel %vm495_vm0, 0.0, %v751_v49 }
  0xec   : > { %v1291_v38 = vperm.slane %v1287_v35, 0 }
  0xef   : > { %1079 = vrot.lane.b32.xlu0 %v1059_v40, %s2510_s13 }
  0xf0   : > { %770 = vrot.lane.b32.xlu1 %v750_v43, %s2510_s13 }
  0xf2   : > { %762 = vrot.lane.b32.xlu2 %v748_v44, %s2514_s21 }
  0xf7   : > { %754 = vrot.lane.b32.xlu0 %v746_v47, %s2513_s20 }
  0xfa   : > { %774 = vrot.lane.b32.xlu2 %v744_v48, %s2515_s22 }
  0xff   : > { %778 = vrot.lane.b32.xlu0 %v752_v50, %s2516_s12 }
 0x134   : > { %v1076_v51 = vpop.permute.xlu2 %1075 }
 0x13c   : > { %v1088_v59 = vpop.permute.xlu2 %1087 }
 0x144   : > { %v1064_v2 = vpop.permute.xlu2 %1063 }
 0x145   : > { %v1090_v8 = vsel %vm659_vm1, %v1037_v26, %v1064_v2 }
 0x149   : > { %v819_v53 = vpop.f32.mrf.mxu1 }
 0x14a   : > { %v1084_v54 = vpop.permute.xlu1 %1083 }
 0x14b   : > { %v1068_v58 = vpop.permute.xlu0 %1067 }
 0x14c   : > { %v806_v52 = vpop.f32.mrf.mxu0  ;;  %v763_v5 = vpop.permute.xlu2 %762  ;;  %v1091_v10 = vsel %vm663_vm2, %v1090_v8, %v1068_v58 }
 0x14f   : > { %v1122_v55 = vpop.f32.mrf.mxu3 }
 0x150   : > { %v1109_v57 = vpop.f32.mrf.mxu2 }
 0x151   : > { %v821_v61 = vpop.f32.mrf.mxu1 }
 0x152   : > { %v1072_v0 = vpop.permute.xlu1 %1071 }
 0x153   : > { %v1092_v13 = vsel %vm666_vm3, %v1091_v10, %v1072_v0 }
 0x154   : > { %v808_v60 = vpop.f32.mrf.mxu0  ;;  %v1093_v19 = vsel %vm669_vm4, %v1092_v13, %v1076_v51  ;;  %v775_v20 = vpop.permute.xlu2 %774 }
 0x157   : > { %v1124_v62 = vpop.f32.mrf.mxu3 }
 0x158   : > { %v1111_v63 = vpop.f32.mrf.mxu2 }
 0x159   : > { %v767_v1 = vpop.permute.xlu0 %766  ;;  %v1282_v63 = vld [vmem:[%s3188_s3] sm:$0xf] }
 0x15a   : > { %v759_v4 = vpop.permute.xlu1 %758  ;;  %v1283_v8 = vpack.c.bf16 %v1282_v63, %v1282_v63 }
 0x15c   : > { %2159 = vmatmul.msk.bf16.vlgmr.msrb.gmra.mxu1 %vm788_vm9, %v1283_v8  ;;  %2158 = vmatmul.msk.bf16.vlgmr.msrb.gmra.mxu0 %vm788_vm9, %v1283_v8 }
 0x161   : > { %v1080_v3 = vpop.permute.xlu0 %1079 }
 0x162   : > { %v771_v16 = vpop.permute.xlu1 %770  ;;  %v1094_v21 = vsel %vm672_vm5, %v1093_v19, %v1080_v3 }
 0x163   : > { %v1095_v25 = vsel %vm675_vm6, %v1094_v21, %v1084_v54 }
 0x164   : > { %v1096_v28 = vsel %vm678_vm7, %v1095_v25, %v1088_v59 }
 0x165   : > { %v2806_v56 = vadd.f32 %v1109_v57, %v1096_v28  ;;  %v2808_v29 = vadd.f32 %v1122_v55, %v1096_v28 }
 0x167   : > { %v2269_v30 = vpack.i.bf16 %v2808_v29, %v2806_v56 }
 0x169   : > { %v755_v6 = vpop.permute.xlu0 %754 }
 0x16a   : > { %v781_v9 = vsel %vm659_vm1, %v728_v41, %v755_v6 }
 0x16b   : > { %v782_v12 = vsel %vm663_vm2, %v781_v9, %v759_v4 }
 0x16c   : > { %v783_v14 = vsel %vm666_vm3, %v782_v12, %v763_v5 }
 0x16d   : > { %v784_v17 = vsel %vm669_vm4, %v783_v14, %v767_v1 }
 0x16e   : > { %v785_v18 = vsel %vm672_vm5, %v784_v17, %v771_v16 }
 0x16f   : > { %v786_v23 = vsel %vm675_vm6, %v785_v18, %v775_v20 }
 0x171   : > { %v779_v22 = vpop.permute.xlu0 %778 }
 0x172   : > { %v787_v24 = vsel %vm678_vm7, %v786_v23, %v779_v22 }
 0x173   : > { %v807_v26 = vadd.f32 %v806_v52, %v787_v24  ;;  %v820_v27 = vadd.f32 %v819_v53, %v787_v24 }
 0x175   : > { %v2264_v7 = vpack.i.bf16 %v820_v27, %v807_v26 }
 0x177   : > { %2265 = vrot.lane.b32.xlu1 %v2264_v7, %s2516_s12  ;;  %2260 = vrot.lane.b32.xlu0 %v2264_v7, %s2513_s20 }
 0x178   : > { %2255 = vrot.lane.b32.xlu2 %v2264_v7, %s2510_s13 }
 0x17f   : > { %2270 = vrot.lane.b32.xlu1 %v2269_v30, %s2510_s13  ;;  %2280 = vrot.lane.b32.xlu0 %v2269_v30, %s2516_s12 }
 0x180   : > { %2275 = vrot.lane.b32.xlu2 %v2269_v30, %s2513_s20 }
 0x187   : > { %2285 = vrot.lane.b32.xlu1 %v2269_v30, %s2515_s22  ;;  %2300 = vrot.lane.b32.xlu0 %v2269_v30, %s2512_s17 }
 0x188   : > { %2290 = vrot.lane.b32.xlu2 %v2269_v30, %s2514_s21 }
 0x18f   : > { %2310 = vrot.lane.b32.xlu1 %v2269_v30, %s2509_s9  ;;  %2305 = vrot.lane.b32.xlu0 %v2264_v7, %s2514_s21 }
 0x190   : > { %2295 = vrot.lane.b32.xlu2 %v2264_v7, %s2515_s22 }
 0x197   : > { %2315 = vrot.lane.b32.xlu1 %v2264_v7, %s2512_s17  ;;  %1306 = vperm.xlu0 %2252, %v1292_v33  }
 0x198   : > { %2320 = vrot.lane.b32.xlu2 %v2264_v7, %s2509_s9 }
 0x19f   : > { %1298 = vperm.xlu1 %2253, %v1290_v36   ;;  %1294 = vperm.xlu0 %2252, %v1289_v37  }
 0x1a0   : > { %1302 = vperm.xlu2 %2251, %v1291_v38  }
 0x1d2   : > { %v2256_v39 = vpop.permute.xlu2 %2255 }
 0x1d3   : > { %v2258_v42 = vunpack.i.h.bf16 %v2256_v39  ;;  %v2257_v43 = vunpack.i.l.bf16 %v2256_v39 }
 0x1d5   : > { %v929_v44 = vrot.slane %v2258_v42, 4  ;;  %v873_v47 = vrot.slane %v2257_v43, 4 }
 0x1da   : > { %v2276_v40 = vpop.permute.xlu2 %2275 }
 0x1db   : > { %v2278_v48 = vunpack.i.h.bf16 %v2276_v40  ;;  %v2277_v54 = vunpack.i.l.bf16 %v2276_v40 }
 0x1dd   : > { %v1244_v60 = vrot.slane %v2278_v48, 4  ;;  %v1188_v4 = vrot.slane %v2277_v54, 4 }
 0x1e2   : > { %v2291_v41 = vpop.permute.xlu2 %2290 }
 0x1e3   : > { %v2293_v61 = vunpack.i.h.bf16 %v2291_v41  ;;  %v2292_v62 = vunpack.i.l.bf16 %v2291_v41 }
 0x1e5   : > { %v1189_v12 = vsel %vm495_vm0, %v1188_v4, %v2292_v62  ;;  %v1245_v13 = vsel %vm495_vm0, %v1244_v60, %v2293_v61 }
 0x1e6   : > { %v2844_v21 = vperm.slane %v1189_v12, %v2643_v11  ;;  %v2847_v22 = vperm.slane %v1245_v13, %v2643_v11 }
 0x1e8   : > { %v1206_v34 = vrot.slane %v2844_v21, 4  ;;  %v1262_v35 = vrot.slane %v2847_v22, 4 }
 0x1e9   : > { %v2266_v45 = vpop.permute.xlu1 %2265  ;;  %v2826_v46 = vpop.permute.xlu0 %2260 }
 0x1ea   : > { %v2268_v49 = vunpack.i.h.bf16 %v2266_v45  ;;  %v2267_v50 = vunpack.i.l.bf16 %v2266_v45  ;;  %v2296_v51 = vpop.permute.xlu2 %2295  ;;  %v2263_v36 = vunpack.i.h.bf16 %v2826_v46  ;;  %v2262_v37 = vunpack.i.l.bf16 %v2826_v46 }
 0x1eb   : > { %v2298_v52 = vunpack.i.h.bf16 %v2296_v51  ;;  %v2297_v53 = vunpack.i.l.bf16 %v2296_v51 }
 0x1ec   : > { %v874_v55 = vsel %vm495_vm0, %v873_v47, %v2267_v50  ;;  %v930_v57 = vsel %vm495_vm0, %v929_v44, %v2268_v49 }
 0x1ed   : > { %v923_v58 = vrot.slane %v2298_v52, 4  ;;  %v867_v59 = vrot.slane %v2297_v53, 4  ;;  %v878_v0 = vperm.slane %v874_v55, %v2643_v11  ;;  %v934_v1 = vperm.slane %v930_v57, %v2643_v11 }
 0x1ee   : > { %v941_v52 = vrot.slane %v2263_v36, 4  ;;  %v885_v53 = vrot.slane %v2262_v37, 4 }
 0x1ef   : > { %v924_v2 = vsel %vm495_vm0, %v923_v58, %v820_v27  ;;  %v868_v3 = vsel %vm495_vm0, %v867_v59, %v807_v26  ;;  %v891_v14 = vrot.slane %v878_v0, 4  ;;  %v947_v16 = vrot.slane %v934_v1, 4 }
 0x1f0   : > { %v928_v5 = vperm.slane %v924_v2, %v2643_v11  ;;  %v872_v6 = vperm.slane %v868_v3, %v2643_v11 }
 0x1f1   : > { %v2271_v9 = vpop.permute.xlu1 %2270  ;;  %v2281_v10 = vpop.permute.xlu0 %2280 }
 0x1f2   : > { %v2273_v17 = vunpack.i.h.bf16 %v2271_v9  ;;  %v2272_v18 = vunpack.i.l.bf16 %v2271_v9  ;;  %v949_v19 = vrot.slane %v928_v5, 4  ;;  %v893_v20 = vrot.slane %v872_v6, 4  ;;  %v2855_v33 = vpop.permute.xlu2 %2320 }
 0x1f3   : > { %v2283_v25 = vunpack.i.h.bf16 %v2281_v10  ;;  %v2282_v26 = vunpack.i.l.bf16 %v2281_v10  ;;  %v892_v27 = vsel %vm495_vm0, %v891_v14, %v872_v6  ;;  %v948_v7 = vsel %vm495_vm0, %v947_v16, %v928_v5 }
 0x1f4   : > { %v1232_v23 = vrot.slane %v2273_v17, 4  ;;  %v1176_v24 = vrot.slane %v2272_v18, 4  ;;  %v894_v28 = vsel %vm495_vm0, %v878_v0, %v893_v20  ;;  %v950_v30 = vsel %vm495_vm0, %v934_v1, %v949_v19 }
 0x1f5   : > { %v2862_v40 = vperm.slane %v892_v27, %v2645_v15  ;;  %v2865_v41 = vperm.slane %v948_v7, %v2645_v15  ;;  %v2868_v44 = vperm.slane %v894_v28, %v2645_v15  ;;  %v2871_v45 = vperm.slane %v950_v30, %v2645_v15 }
 0x1f6   : > { %v1233_v31 = vsel %vm495_vm0, %v1232_v23, %v2283_v25  ;;  %v1177_v32 = vsel %vm495_vm0, %v1176_v24, %v2282_v26  ;;  %v2323_v54 = vunpack.i.h.bf16 %v2855_v33  ;;  %v2322_v55 = vunpack.i.l.bf16 %v2855_v33 }
 0x1f7   : > { %v1237_v47 = vperm.slane %v1233_v31, %v2643_v11  ;;  %v1181_v46 = vperm.slane %v1177_v32, %v2643_v11  ;;  %v917_v59 = vrot.slane %v2862_v40, 4  ;;  %v973_v60 = vrot.slane %v2865_v41, 4 }
 0x1f8   : > { %v921_v1 = vrot.slane %v2868_v44, 4  ;;  %v977_v2 = vrot.slane %v2871_v45, 4 }
 0x1f9   : > { %v2286_v38 = vpop.permute.xlu1 %2285  ;;  %v2301_v39 = vpop.permute.xlu0 %2300  ;;  %v1250_v61 = vrot.slane %v1237_v47, 4  ;;  %v1194_v62 = vrot.slane %v1181_v46, 4 }
 0x1fa   : > { %v2288_v42 = vunpack.i.h.bf16 %v2286_v38  ;;  %v2287_v43 = vunpack.i.l.bf16 %v2286_v38  ;;  %v2303_v50 = vunpack.i.h.bf16 %v2301_v39  ;;  %v2302_v51 = vunpack.i.l.bf16 %v2301_v39  ;;  %v2891_v18 = vpop.permute.xlu2 %1302 }
 0x1fb   : > { %v1309_v31 = vrot.slane %v2891_v18, 4 }
 0x1fc   : > { %v1226_v48 = vrot.slane %v2288_v42, 4  ;;  %v1170_v49 = vrot.slane %v2287_v43, 4  ;;  %v1238_v3 = vrot.slane %v2303_v50, 4  ;;  %v1182_v4 = vrot.slane %v2302_v51, 4 }
 0x1fe   : > { %v1227_v57 = vsel %vm495_vm0, %v1226_v48, %v2808_v29  ;;  %v1171_v58 = vsel %vm495_vm0, %v1170_v49, %v2806_v56 }
 0x1ff   : > { %v1231_v63 = vperm.slane %v1227_v57, %v2643_v11  ;;  %v1175_v0 = vperm.slane %v1171_v58, %v2643_v11 }
 0x201   : > { %v1252_v29 = vrot.slane %v1231_v63, 4  ;;  %v1195_v5 = vsel %vm495_vm0, %v1194_v62, %v1175_v0  ;;  %v1196_v56 = vrot.slane %v1175_v0, 4  ;;  %v1251_v6 = vsel %vm495_vm0, %v1250_v61, %v1231_v63  ;;  %v2311_v8 = vpop.permute.xlu1 %2310  ;;  %v2306_v9 = vpop.permute.xlu0 %2305 }
 0x202   : > { %v2313_v10 = vunpack.i.h.bf16 %v2311_v8  ;;  %v2312_v12 = vunpack.i.l.bf16 %v2311_v8  ;;  %v2308_v13 = vunpack.i.h.bf16 %v2306_v9  ;;  %v2307_v14 = vunpack.i.l.bf16 %v2306_v9 }
 0x203   : > { %v1197_v16 = vsel %vm495_vm0, %v1181_v46, %v1196_v56  ;;  %v1253_v17 = vsel %vm495_vm0, %v1237_v47, %v1252_v29  ;;  %v1201_v19 = vperm.slane %v1195_v5, %v2645_v15  ;;  %v1257_v20 = vperm.slane %v1251_v6, %v2645_v15 }
 0x204   : > { %v1183_v23 = vsel %vm495_vm0, %v1182_v4, %v2312_v12  ;;  %v1239_v24 = vsel %vm495_vm0, %v1238_v3, %v2313_v10  ;;  %v886_v25 = vsel %vm495_vm0, %v885_v53, %v2307_v14  ;;  %v942_v26 = vsel %vm495_vm0, %v941_v52, %v2308_v13 }
 0x205   : > { %v1187_v27 = vperm.slane %v1183_v23, %v2643_v11  ;;  %v1243_v7 = vperm.slane %v1239_v24, %v2643_v11  ;;  %v890_v28 = vperm.slane %v886_v25, %v2643_v11  ;;  %v946_v30 = vperm.slane %v942_v26, %v2643_v11 }
 0x206   : > { %v1220_v32 = vrot.slane %v1201_v19, 4  ;;  %v2905_v36 = vperm.slane %v1197_v16, %v2645_v15  ;;  %v2908_v37 = vperm.slane %v1253_v17, %v2645_v15  ;;  %v1276_v43 = vrot.slane %v1257_v20, 4 }
 0x207   : > { %v1208_v38 = vrot.slane %v1187_v27, 4  ;;  %v1264_v39 = vrot.slane %v1243_v7, 4  ;;  %v903_v42 = vrot.slane %v890_v28, 4  ;;  %v959_v47 = vrot.slane %v946_v30, 4 }
 0x208   : > { %v1207_v46 = vsel %vm495_vm0, %v1206_v34, %v1187_v27  ;;  %v1263_v48 = vsel %vm495_vm0, %v1262_v35, %v1243_v7  ;;  %v1224_v49 = vrot.slane %v2905_v36, 4  ;;  %v1280_v58 = vrot.slane %v2908_v37, 4 }
 0x209   : > { %v2316_v50 = vpop.permute.xlu1 %2315  ;;  %v1307_v51 = vpop.permute.xlu0 %1306  ;;  %v1213_v52 = vperm.slane %v1207_v46, %v2645_v15  ;;  %v1269_v53 = vperm.slane %v1263_v48, %v2645_v15  ;;  %v1209_v57 = vsel %vm495_vm0, %v2844_v21, %v1208_v38  ;;  %v1265_v35 = vsel %vm495_vm0, %v2847_v22, %v1264_v39 }
 0x20a   : > { %v2318_v61 = vunpack.i.h.bf16 %v2316_v50  ;;  %v2317_v62 = vunpack.i.l.bf16 %v2316_v50  ;;  %v1217_v34 = vperm.slane %v1209_v57, %v2645_v15  ;;  %v1273_v10 = vperm.slane %v1265_v35, %v2645_v15 }
 0x20b   : > { %v1221_v63 = vsel %vm495_vm0, %v1213_v52, %v1220_v32  ;;  %v1277_v0 = vsel %vm495_vm0, %v1269_v53, %v1276_v43  ;;  %v1218_v3 = vrot.slane %v1213_v52, 4  ;;  %v1274_v4 = vrot.slane %v1269_v53, 4 }
 0x20c   : > { %v935_v29 = vrot.slane %v2318_v61, 4  ;;  %v879_v5 = vrot.slane %v2317_v62, 4  ;;  %v1595_v56 = vpack.c.bf16 %v1221_v63, %v1221_v63  ;;  %v1596_v6 = vpack.c.bf16 %v1277_v0, %v1277_v0 }
 0x20d   : > { %v1219_v21 = vsel %vm495_vm0, %v1218_v3, %v1201_v19  ;;  %v1275_v8 = vsel %vm495_vm0, %v1274_v4, %v1257_v20  ;;  %v1225_v9 = vsel %vm495_vm0, %v1217_v34, %v1224_v49  ;;  %v1321_v19 = vrot.slane %v1307_v51, 4 }
 0x20e   : > { %v880_v22 = vsel %vm495_vm0, %v879_v5, %v2322_v55  ;;  %v936_v12 = vsel %vm495_vm0, %v935_v29, %v2323_v54  ;;  %v1646_v13 = vunpack.c.l.b16 %v1595_v56  ;;  %v1647_v14 = vunpack.c.l.b16 %v1596_v6 }
 0x20f   : > { %v884_v16 = vperm.slane %v880_v22, %v2643_v11  ;;  %v940_v17 = vperm.slane %v936_v12, %v2643_v11  ;;  %v1593_v20 = vpack.c.bf16 %v1219_v21, %v1219_v21  ;;  %v1594_v24 = vpack.c.bf16 %v1275_v8, %v1275_v8 }
 0x210   : > { %v1648_v23 = vpack.c.b16 %v1647_v14, %v1646_v13  ;;  %v1281_v25 = vsel %vm495_vm0, %v1273_v10, %v1280_v58  ;;  %v1599_v26 = vpack.c.bf16 %v1225_v9, %v1225_v9  ;;  %v1222_v54 = vrot.slane %v1217_v34, 4 }
 0x211   : > { %v904_v27 = vsel %vm495_vm0, %v903_v42, %v884_v16  ;;  %v905_v55 = vrot.slane %v884_v16, 4  ;;  %v961_v7 = vrot.slane %v940_v17, 4  ;;  %v1299_v33 = vpop.permute.xlu1 %1298  ;;  %v1295_v32 = vpop.permute.xlu0 %1294  ;;  %v960_v39 = vsel %vm495_vm0, %v959_v47, %v940_v17 }
 0x212   : > { %v910_v38 = vperm.slane %v904_v27, %v2645_v15  ;;  %v1322_v43 = vsel %vm495_vm0, %v1321_v19, %v1299_v33  ;;  %v1323_v46 = vrot.slane %v1299_v33, 4  ;;  %v1310_v42 = vsel %vm495_vm0, %v1309_v31, %v1295_v32 }
 0x213   : > { %v906_v48 = vsel %vm495_vm0, %v890_v28, %v905_v55  ;;  %v962_v49 = vsel %vm495_vm0, %v946_v30, %v961_v7  ;;  %v1328_v50 = vperm.slane %v1322_v43, %v2643_v11  ;;  %v1311_v47 = vrot.slane %v1295_v32, 4 }
 0x214   : > { %v2949_v52 = vperm.slane %v906_v48, %v2645_v15  ;;  %v2952_v53 = vperm.slane %v962_v49, %v2645_v15  ;;  %v1324_v57 = vsel %vm495_vm0, %v1307_v51, %v1323_v46  ;;  %v966_v58 = vperm.slane %v960_v39, %v2645_v15 }
 0x215   : > { %v2957_v61 = vperm.slane %v1324_v57, %v2643_v11  ;;  %v1316_v28 = vperm.slane %v1310_v42, %v2643_v11  ;;  %v1653_v30 = vsel %vm659_vm1, %v1648_v23, 0  ;;  %v1333_v62 = vrot.slane %v1328_v50, 4 }
 0x216   : > { %v919_v31 = vrot.slane %v2949_v52, 4  ;;  %v1312_v34 = vsel %vm495_vm0, %v2891_v18, %v1311_v47  ;;  %1662 = vmatpush.bf16.xpose.msrb.mxu3 %v1653_v30  ;;  %v1616_v35 = vunpack.c.l.b16 %v1593_v20  ;;  %v975_v51 = vrot.slane %v2952_v53, 4 }
 0x217   : > { %v1345_v63 = vrot.slane %v2957_v61, 4  ;;  %v1335_v0 = vrot.slane %v1316_v28, 4  ;;  %v1617_v3 = vunpack.c.l.b16 %v1594_v24  ;;  %v1600_v4 = vpack.c.bf16 %v1281_v25, %v1281_v25 }
 0x218   : > { %v1706_v29 = vunpack.c.l.b16 %v1599_v26  ;;  %v1223_v5 = vsel %vm495_vm0, %v1222_v54, %v2905_v36  ;;  %v1278_v56 = vrot.slane %v1273_v10, 4  ;;  %v1320_v6 = vperm.slane %v1312_v34, %v2643_v11 }
 0x219   : > { %v1618_v21 = vpack.c.b16 %v1617_v3, %v1616_v35  ;;  %v1597_v8 = vpack.c.bf16 %v1223_v5, %v1223_v5  ;;  %v1336_v18 = vsel %vm495_vm0, %v1328_v50, %v1335_v0  ;;  %v1707_v9 = vunpack.c.l.b16 %v1600_v4  ;;  %v1425_v5 = vpop.f32.mrf.mxu1 }
 0x21a   : > { %v1279_v22 = vsel %vm495_vm0, %v1278_v56, %v2908_v37  ;;  %v1344_v12 = vperm.slane %v1336_v18, %v2645_v15  ;;  %v918_v13 = vsel %vm495_vm0, %v910_v38, %v917_v59  ;;  %v974_v16 = vsel %vm495_vm0, %v966_v58, %v973_v60  ;;  %v1412_v56 = vpop.f32.mrf.mxu0 }
 0x21b   : > { %v1623_v14 = vsel %vm659_vm1, %v1618_v21, 0  ;;  %v1598_v36 = vpack.c.bf16 %v1279_v22, %v1279_v22  ;;  %v1676_v10 = vunpack.c.l.b16 %v1597_v8  ;;  %v1708_v17 = vpack.c.b16 %v1707_v9, %v1706_v29 }
 0x21c   : > { %1632 = vmatpush.bf16.xpose.msrb.mxu2 %v1623_v14  ;;  %1370 = vrot.lane.b32.xlu2 %v1344_v12, %s2512_s17  ;;  %v1587_v19 = vpack.c.bf16 %v918_v13, %v918_v13  ;;  %v1588_v37 = vpack.c.bf16 %v974_v16, %v974_v16  ;;  %v1359_v20 = vrot.slane %v1344_v12, 4  ;;  %v1334_v24 = vsel %vm495_vm0, %v1333_v62, %v1316_v28 }
 0x21d   : > { %v1677_v23 = vunpack.c.l.b16 %v1598_v36  ;;  %v915_v25 = vrot.slane %v910_v38, 4  ;;  %v971_v59 = vrot.slane %v966_v58, 4  ;;  %v1713_v26 = vsel %vm659_vm1, %v1708_v17, 0 }
 0x21e   : > { %v1641_v27 = vunpack.c.l.b16 %v1587_v19  ;;  %v1642_v55 = vunpack.c.l.b16 %v1588_v37  ;;  %v1360_v7 = vsel %vm495_vm0, 0.0, %v1359_v20  ;;  %v1347_v33 = vrot.slane %v1320_v6, 4  ;;  %1722 = vmatpush.bf16.xpose.msra.mxu1 %v1713_v26 }
 0x21f   : > { %v1678_v60 = vpack.c.b16 %v1677_v23, %v1676_v10  ;;  %1374 = vrot.lane.b32.xlu0 %v1360_v7, %s2514_s21  ;;  %v1340_v32 = vperm.slane %v1334_v24, %v2645_v15  ;;  %v916_v54 = vsel %vm495_vm0, %v915_v25, %v2862_v40  ;;  %v972_v38 = vsel %vm495_vm0, %v971_v59, %v2865_v41 }
 0x220   : > { %v1643_v39 = vpack.c.b16 %v1642_v55, %v1641_v27  ;;  %v1585_v43 = vpack.c.bf16 %v916_v54, %v916_v54  ;;  %v922_v46 = vsel %vm495_vm0, %v2949_v52, %v921_v1  ;;  %v1586_v50 = vpack.c.bf16 %v972_v38, %v972_v38 }
 0x221   : > { %v1683_v48 = vsel %vm659_vm1, %v1678_v60, 0  ;;  %v1357_v49 = vrot.slane %v1340_v32, 4  ;;  %v978_v42 = vsel %vm495_vm0, %v2952_v53, %v977_v2  ;;  %v1591_v41 = vpack.c.bf16 %v922_v46, %v922_v46 }
 0x222   : > { %1692 = vmatpush.bf16.xpose.msra.mxu0 %v1683_v48  ;;  %2161 = vmatmul.msk.bf16.vlgmr.msrb.gmra.mxu3 %vm659_vm1, %v1643_v39  ;;  %v1611_v40 = vunpack.c.l.b16 %v1585_v43  ;;  %v1592_v57 = vpack.c.bf16 %v978_v42, %v978_v42  ;;  %v920_v47 = vsel %vm495_vm0, %v919_v31, %v2868_v44  ;;  %v1612_v52 = vunpack.c.l.b16 %v1586_v50  ;;  %v1414_v21 = vpop.f32.mrf.mxu0 }
 0x223   : > { %v1358_v1 = vsel %vm495_vm0, 0.0, %v1357_v49  ;;  %v976_v58 = vsel %vm495_vm0, %v975_v51, %v2871_v45  ;;  %v1589_v28 = vpack.c.bf16 %v920_v47, %v920_v47  ;;  %v1701_v30 = vunpack.c.l.b16 %v1591_v41 }
 0x224   : > { %1366 = vrot.lane.b32.xlu1 %v1358_v1, %s2513_s20  ;;  %v1702_v2 = vunpack.c.l.b16 %v1592_v57  ;;  %v1590_v53 = vpack.c.bf16 %v976_v58, %v976_v58  ;;  %v1346_v62 = vsel %vm495_vm0, %v1345_v63, %v1320_v6  ;;  %v1613_v34 = vpack.c.b16 %v1612_v52, %v1611_v40  ;;  %v1427_v6 = vpop.f32.mrf.mxu1 }
 0x225   : > { %v1671_v35 = vunpack.c.l.b16 %v1589_v28  ;;  %v1352_v0 = vperm.slane %v1346_v62, %v2645_v15  ;;  %v1348_v44 = vsel %vm495_vm0, %v2957_v61, %v1347_v33 }
 0x226   : > { %v1703_v31 = vpack.c.b16 %v1702_v2, %v1701_v30  ;;  %v1672_v3 = vunpack.c.l.b16 %v1590_v53  ;;  %v1356_v4 = vperm.slane %v1348_v44, %v2645_v15  ;;  %2160 = vmatmul.msk.bf16.vlgmr.msrb.gmra.mxu2 %vm659_vm1, %v1613_v34 }
 0x227   : > { %v1361_v45 = vrot.slane %v1352_v0, 4 }
 0x228   : > { %2163 = vmatmul.msk.bf16.vlgmr.msra.gmra.mxu1 %vm659_vm1, %v1703_v31  ;;  %v1673_v51 = vpack.c.b16 %v1672_v3, %v1671_v35  ;;  %1386 = vrot.lane.b32.xlu0 %v1356_v4, %s2515_s22  ;;  %v1363_v61 = vrot.slane %v1356_v4, 4 }
 0x229   : > { %v1362_v63 = vsel %vm495_vm0, 0.0, %v1361_v45 }
 0x22a   : > { %2162 = vmatmul.msk.bf16.vlgmr.msra.gmra.mxu0 %vm659_vm1, %v1673_v51  ;;  %1382 = vrot.lane.b32.xlu2 %v1362_v63, %s2510_s13  ;;  %v1364_v29 = vsel %vm495_vm0, 0.0, %v1363_v61 }
 0x22c   : > { %1378 = vrot.lane.b32.xlu1 %v1352_v0, %s2509_s9 }
 0x234   : > { %1390 = vrot.lane.b32.xlu1 %v1364_v29, %s2516_s12 }
 0x276   : > { %v1371_v18 = vpop.permute.xlu2 %1370 }
 0x284   : > { %v1383_v10 = vpop.permute.xlu2 %1382 }
 0x291   : > { %v1375_v22 = vpop.permute.xlu0 %1374 }
 0x296   : > { %v1367_v8 = vpop.permute.xlu1 %1366 }
 0x297   : > { %v1393_v9 = vsel %vm659_vm1, %v1340_v32, %v1367_v8 }
 0x298   : > { %v1394_v12 = vsel %vm663_vm2, %v1393_v9, %v1371_v18 }
 0x299   : > { %v1395_v14 = vsel %vm666_vm3, %v1394_v12, %v1375_v22 }
 0x29a   : > { %v1387_v17 = vpop.permute.xlu0 %1386 }
 0x29e   : > { %v1379_v13 = vpop.permute.xlu1 %1378 }
 0x29f   : > { %v1396_v36 = vsel %vm669_vm4, %v1395_v14, %v1379_v13 }
 0x2a0   : > { %v1397_v16 = vsel %vm672_vm5, %v1396_v36, %v1383_v10 }
 0x2a1   : > { %v1398_v19 = vsel %vm675_vm6, %v1397_v16, %v1387_v17 }
 0x2a5   : > { %v3044_v33 = vpop.f32.mrf.mxu1  ;;  %v3046_v60 = vpop.f32.mrf.mxu3 }
 0x2a6   : > { %v1391_v37 = vpop.permute.xlu1 %1390  ;;  %v1735_v54 = vsel %vm659_vm1, %v3046_v60, -inf  ;;  %v1747_v50 = vsel %vm659_vm1, %v3044_v33, -inf }
 0x2a7   : > { %v1399_v20 = vsel %vm678_vm7, %v1398_v19, %v1391_v37  ;;  %v3036_v26 = vpop.f32.mrf.mxu0 }
 0x2a8   : > { %v1413_v23 = vadd.f32 %v1412_v56, %v1399_v20  ;;  %v1426_v24 = vadd.f32 %v1425_v5, %v1399_v20  ;;  %v1741_v55 = vsel %vm659_vm1, %v3036_v26, -inf }
 0x2a9   : > { %v3034_v59 = vpop.f32.mrf.mxu2 }
 0x2aa   : > { %v2334_v25 = vpack.i.bf16 %v1426_v24, %v1413_v23  ;;  %v1729_v39 = vsel %vm659_vm1, %v3034_v59, -inf }
 0x2ac   : > { %2335 = vrot.lane.b32.xlu1 %v2334_v25, %s2516_s12  ;;  %2330 = vrot.lane.b32.xlu0 %v2334_v25, %s2513_s20 }
 0x2ad   : > { %2325 = vrot.lane.b32.xlu2 %v2334_v25, %s2510_s13  ;;  %v3056_v43 = vpop.f32.mrf.mxu1  ;;  %v3058_v46 = vpop.f32.mrf.mxu3 }
 0x2ae   : > { %v1738_v48 = vsel %vm659_vm1, %v3058_v46, -inf  ;;  %v1750_v49 = vsel %vm659_vm1, %v3056_v43, -inf }
 0x2af   : > { %v3048_v32 = vpop.f32.mrf.mxu0 }
 0x2b0   : > { %v1744_v38 = vsel %vm659_vm1, %v3048_v32, -inf }
 0x2b1   : > { %v3038_v27 = vpop.f32.mrf.mxu2 }
 0x2b2   : > { %v1732_v7 = vsel %vm659_vm1, %v3038_v27, -inf }
 0x2b4   : > { %2350 = vrot.lane.b32.xlu1 %v2334_v25, %s2512_s17  ;;  %2345 = vrot.lane.b32.xlu0 %v2334_v25, %s2514_s21 }
 0x2b5   : > { %2340 = vrot.lane.b32.xlu2 %v2334_v25, %s2515_s22  ;;  %s1946_s22 = scalar_lea.sflag [#allocation4], %s2633_s28 }
 0x2bd   : > { %2355 = vrot.lane.b32.xlu2 %v2334_v25, %s2509_s9  ;;  %s3128_s9 = scalar_lea.vmem [#allocation5], %s2152_s18  ;;  %s2174_s18 = sshll.u32 %s2495_s27, 6 }
 0x2be   : > { %s1960_s20 = scalar_lea.hbm %s3192_s7, %s2174_s18  ;;  %s1961_s27 = sshll.u32 %s3128_s9, 4  ;;  %s1962_s27 = int_to_ptr.vmem [resolvable:$true] %s1961_s27 }
 0x2bf   : > { %s1963_s21 = sshll.u32 %s1960_s20, 4  ;;  %s1964_s21 = int_to_ptr.hbm [resolvable:$true] %s1963_s21 }
 0x2c0   : > { %s2435_s12 = sshra.s32 %s1964_s21, 4  ;;  %s2436_s12 = int_to_ptr.hbm [resolvable:$true] %s2435_s12 }
 0x2c1   : > { %s2437_s23 = scalar_lea.hbm %s2436_s12, 64  ;;  %p2442_p7 = scmp.lt.s32.totalorder %s2436_s12, %s3192_s7 }
 0x2c2   : > { %p2438_p4 = scmp.ne.s32.totalorder %s2436_s12, %s2437_s23  ;;  %p2443_p8 = scmp.lt.s32.totalorder %s2441_s10, %s2437_s23 }
 0x2c4   : > { %p2439_p5 = pnand %p2438_p4, %p2610_p9  ;;  %p2444_p10 = por %p2443_p8, %p2442_p7 }
 0x2c6   : > { %p2440_p6 = pneg %p2439_p5 }
 0x2c8   : > { %p2445_p13 = pnand %p2444_p10, %p2440_p6 }
 0x2de   : > { %1742 = vmax.xlane.f32.xlu0 %v1741_v55  ;;  %1733 = vmax.xlane.f32.xlu1 %v1732_v7 }
 0x2e6   : > { %1736 = vmax.xlane.f32.xlu2 %v1735_v54  ;;  %1730 = vmax.xlane.f32.xlu0 %v1729_v39 }
 0x2e7   : > { %1745 = vmax.xlane.f32.xlu1 %v1744_v38 }
 0x2ee   : > { %1739 = vmax.xlane.f32.xlu2 %v1738_v48  ;;  %1751 = vmax.xlane.f32.xlu0 %v1750_v49 }
 0x2f6   : > { %1748 = vmax.xlane.f32.xlu2 %v1747_v50 }
 0x307   : > { %v2326_v42 = vpop.permute.xlu2 %2325 }
 0x308   : > { %v2328_v47 = vunpack.i.h.bf16 %v2326_v42  ;;  %v2327_v1 = vunpack.i.l.bf16 %v2326_v42 }
 0x30a   : > { %v1535_v28 = vrot.slane %v2328_v47, 4  ;;  %v1479_v30 = vrot.slane %v2327_v1, 4 }
 0x30f   : > { %v2341_v40 = vpop.permute.xlu2 %2340 }
 0x310   : > { %v2343_v41 = vunpack.i.h.bf16 %v2341_v40  ;;  %v2342_v57 = vunpack.i.l.bf16 %v2341_v40 }
 0x312   : > { %v1529_v52 = vrot.slane %v2343_v41, 4  ;;  %v1473_v58 = vrot.slane %v2342_v57, 4 }
 0x314   : > { %v1530_v62 = vsel %vm495_vm0, %v1529_v52, %v1426_v24  ;;  %v1474_v34 = vsel %vm495_vm0, %v1473_v58, %v1413_v23 }
 0x315   : > { %v1534_v3 = vperm.slane %v1530_v62, %v2643_v11  ;;  %v1478_v4 = vperm.slane %v1474_v34, %v2643_v11 }
 0x317   : > { %v2356_v63 = vpop.permute.xlu2 %2355  ;;  %v1555_v6 = vrot.slane %v1534_v3, 4  ;;  %v1499_v21 = vrot.slane %v1478_v4, 4 }
 0x318   : > { %v2358_v8 = vunpack.i.h.bf16 %v2356_v63  ;;  %v2357_v18 = vunpack.i.l.bf16 %v2356_v63 }
 0x31e   : > { %v2336_v2 = vpop.permute.xlu1 %2335  ;;  %v2331_v53 = vpop.permute.xlu0 %2330 }
 0x31f   : > { %v2338_v35 = vunpack.i.h.bf16 %v2336_v2  ;;  %v2337_v0 = vunpack.i.l.bf16 %v2336_v2  ;;  %v2333_v5 = vunpack.i.h.bf16 %v2331_v53  ;;  %v2332_v56 = vunpack.i.l.bf16 %v2331_v53 }
 0x321   : > { %v1480_v44 = vsel %vm495_vm0, %v1479_v30, %v2337_v0  ;;  %v1536_v31 = vsel %vm495_vm0, %v1535_v28, %v2338_v35  ;;  %v1547_v10 = vrot.slane %v2333_v5, 4  ;;  %v1491_v16 = vrot.slane %v2332_v56, 4 }
 0x322   : > { %v1484_v45 = vperm.slane %v1480_v44, %v2643_v11  ;;  %v1540_v51 = vperm.slane %v1536_v31, %v2643_v11 }
 0x324   : > { %v1497_v61 = vrot.slane %v1484_v45, 4  ;;  %v1553_v29 = vrot.slane %v1540_v51, 4  ;;  %v1500_v37 = vsel %vm495_vm0, %v1484_v45, %v1499_v21  ;;  %v1556_v20 = vsel %vm495_vm0, %v1540_v51, %v1555_v6 }
 0x325   : > { %v1508_v40 = vperm.slane %v1500_v37, %v2645_v15  ;;  %v1564_v41 = vperm.slane %v1556_v20, %v2645_v15 }
 0x326   : > { %v2351_v9 = vpop.permute.xlu1 %2350  ;;  %v2346_v22 = vpop.permute.xlu0 %2345  ;;  %v1498_v12 = vsel %vm495_vm0, %v1497_v61, %v1478_v4  ;;  %v1554_v13 = vsel %vm495_vm0, %v1553_v29, %v1534_v3 }
 0x327   : > { %v2353_v14 = vunpack.i.h.bf16 %v2351_v9  ;;  %v2352_v36 = vunpack.i.l.bf16 %v2351_v9  ;;  %v2348_v17 = vunpack.i.h.bf16 %v2346_v22  ;;  %v2347_v19 = vunpack.i.l.bf16 %v2346_v22 }
 0x328   : > { %v1504_v25 = vperm.slane %v1498_v12, %v2645_v15  ;;  %v1560_v55 = vperm.slane %v1554_v13, %v2645_v15  ;;  %v1527_v44 = vrot.slane %v1508_v40, 4  ;;  %v1583_v31 = vrot.slane %v1564_v41, 4 }
 0x329   : > { %v1541_v23 = vrot.slane %v2353_v14, 4  ;;  %v1485_v24 = vrot.slane %v2352_v36, 4  ;;  %v1492_v7 = vsel %vm495_vm0, %v1491_v16, %v2347_v19  ;;  %v1548_v54 = vsel %vm495_vm0, %v1547_v10, %v2348_v17 }
 0x32a   : > { %v1496_v48 = vperm.slane %v1492_v7, %v2643_v11  ;;  %v1552_v49 = vperm.slane %v1548_v54, %v2643_v11  ;;  %v1523_v30 = vrot.slane %v1504_v25, 4  ;;  %v1579_v2 = vrot.slane %v1560_v55, 4 }
 0x32b   : > { %v1486_v39 = vsel %vm495_vm0, %v1485_v24, %v2357_v18  ;;  %v1542_v38 = vsel %vm495_vm0, %v1541_v23, %v2358_v8 }
 0x32c   : > { %v1490_v50 = vperm.slane %v1486_v39, %v2643_v11  ;;  %v1546_v42 = vperm.slane %v1542_v38, %v2643_v11  ;;  %v1509_v57 = vrot.slane %v1496_v48, 4  ;;  %v1565_v47 = vrot.slane %v1552_v49, 4 }
 0x32e   : > { %v1511_v1 = vrot.slane %v1490_v50, 4  ;;  %v1567_v52 = vrot.slane %v1546_v42, 4  ;;  %v1510_v58 = vsel %vm495_vm0, %v1509_v57, %v1490_v50  ;;  %v1566_v28 = vsel %vm495_vm0, %v1565_v47, %v1546_v42 }
 0x32f   : > { %v1516_v11 = vperm.slane %v1510_v58, %v2645_v15  ;;  %v1572_v34 = vperm.slane %v1566_v28, %v2645_v15 }
 0x330   : > { %v1512_v53 = vsel %vm495_vm0, %v1496_v48, %v1511_v1  ;;  %v1568_v62 = vsel %vm495_vm0, %v1552_v49, %v1567_v52 }
 0x331   : > { %v1520_v35 = vperm.slane %v1512_v53, %v2645_v15  ;;  %v1576_v0 = vperm.slane %v1568_v62, %v2645_v15  ;;  %v1524_v3 = vsel %vm495_vm0, %v1516_v11, %v1523_v30  ;;  %v1580_v4 = vsel %vm495_vm0, %v1572_v34, %v1579_v2 }
 0x332   : > { %v1521_v45 = vrot.slane %v1516_v11, 4  ;;  %v1577_v51 = vrot.slane %v1572_v34, 4  ;;  %v1603_v63 = vpack.c.bf16 %v1524_v3, %v1524_v3  ;;  %v1604_v61 = vpack.c.bf16 %v1580_v4, %v1580_v4 }
 0x333   : > { %v1528_v29 = vsel %vm495_vm0, %v1520_v35, %v1527_v44  ;;  %v1584_v5 = vsel %vm495_vm0, %v1576_v0, %v1583_v31  ;;  %v1525_v14 = vrot.slane %v1520_v35, 4  ;;  %v1581_v36 = vrot.slane %v1576_v0, 4 }
 0x334   : > { %v1522_v56 = vsel %vm495_vm0, %v1521_v45, %v1504_v25  ;;  %v1578_v6 = vsel %vm495_vm0, %v1577_v51, %v1560_v55  ;;  %v1607_v21 = vpack.c.bf16 %v1528_v29, %v1528_v29  ;;  %v1608_v15 = vpack.c.bf16 %v1584_v5, %v1584_v5 }
 0x335   : > { %v1844_v8 = vunpack.c.l.b16 %v1603_v63  ;;  %v1845_v18 = vunpack.c.l.b16 %v1604_v61  ;;  %v1601_v9 = vpack.c.bf16 %v1522_v56, %v1522_v56  ;;  %v1602_v22 = vpack.c.bf16 %v1578_v6, %v1578_v6 }
 0x336   : > { %v1900_v12 = vunpack.c.l.b16 %v1607_v21  ;;  %v1901_v13 = vunpack.c.l.b16 %v1608_v15  ;;  %v1526_v37 = vsel %vm495_vm0, %v1525_v14, %v1508_v40  ;;  %v1582_v20 = vsel %vm495_vm0, %v1581_v36, %v1564_v41 }
 0x337   : > { %v1846_v10 = vpack.c.b16 %v1845_v18, %v1844_v8  ;;  %v1816_v16 = vunpack.c.l.b16 %v1601_v9  ;;  %v1817_v17 = vunpack.c.l.b16 %v1602_v22  ;;  %v1605_v24 = vpack.c.bf16 %v1526_v37, %v1526_v37 }
 0x338   : > { %v1902_v19 = vpack.c.b16 %v1901_v13, %v1900_v12  ;;  %v1606_v25 = vpack.c.bf16 %v1582_v20, %v1582_v20 }
 0x339   : > { %1858 = vmatpush.bf16.msra.mxu3 %v1846_v10  ;;  %v1818_v23 = vpack.c.b16 %v1817_v17, %v1816_v16  ;;  %v1872_v55 = vunpack.c.l.b16 %v1605_v24 }
 0x33a   : > { %1914 = vmatpush.bf16.msrb.mxu1 %v1902_v19  ;;  %v1873_v7 = vunpack.c.l.b16 %v1606_v25 }
 0x33b   : > { %1830 = vmatpush.bf16.msra.mxu2 %v1818_v23 }
 0x33c   : > { %v1874_v54 = vpack.c.b16 %v1873_v7, %v1872_v55 }
 0x33e   : > { %1886 = vmatpush.bf16.msrb.mxu0 %v1874_v54 }
 0x351   : > { %v1743_v39 = vpop.xlane.xlu0 %1742  ;;  %v1734_v38 = vpop.xlane.xlu1 %1733 }
 0x352   : > { %v1757_v48 = vsub.f32 %v3036_v26, %v1743_v39  ;;  %v1754_v49 = vsub.f32 %v3038_v27, %v1734_v38 }
 0x354   : > { %v1769_v50 = vmul.f32 1.442695, %v1757_v48  ;;  %v1763_v42 = vmul.f32 1.442695, %v1754_v49 }
 0x356   : > { %2359 = vpow2.f32 %v1769_v50 }
 0x357   : > { %2361 = vpow2.f32 %v1763_v42 }
 0x359   : > { %v1737_v40 = vpop.xlane.xlu2 %1736  ;;  %v1731_v41 = vpop.xlane.xlu0 %1730 }
 0x35a   : > { %v1755_v57 = vsub.f32 %v3046_v60, %v1737_v40  ;;  %v1753_v47 = vsub.f32 %v3034_v59, %v1731_v41  ;;  %v1746_v1 = vpop.xlane.xlu1 %1745 }
 0x35b   : > { %v1758_v52 = vsub.f32 %v3048_v32, %v1746_v1 }
 0x35c   : > { %v2360_v58 = vpop.eup %2359  ;;  %v1765_v28 = vmul.f32 1.442695, %v1755_v57  ;;  %v1761_v30 = vmul.f32 1.442695, %v1753_v47 }
 0x35d   : > { %v1771_v2 = vmul.f32 1.442695, %v1758_v52  ;;  %v1789_v26 = vsel %vm659_vm1, %v2360_v58, 0.0  ;;  %v2362_v27 = vpop.eup %2361  ;;  %v1805_v44 = vpack.c.bf16 %v2360_v58, %v2360_v58 }
 0x35e   : > { %2363 = vpow2.f32 %v1765_v28  ;;  %1790 = vadd.xlane.f32.xlu2 %v1789_v26  ;;  %v1802_v34 = vpack.c.bf16 %v2362_v27, %v2362_v27  ;;  %v1780_v3 = vsel %vm659_vm1, %v2362_v27, 0.0 }
 0x35f   : > { %2365 = vpow2.f32 %v1761_v30  ;;  %v1867_v61 = vunpack.c.l.b16 %v1805_v44 }
 0x360   : > { %2367 = vpow2.f32 %v1771_v2 }
 0x361   : > { %v1740_v53 = vpop.xlane.xlu2 %1739  ;;  %v1752_v62 = vpop.xlane.xlu0 %1751 }
 0x362   : > { %v1756_v60 = vsub.f32 %v3058_v46, %v1740_v53  ;;  %v1760_v59 = vsub.f32 %v3056_v43, %v1752_v62  ;;  %v1812_v43 = vunpack.c.l.b16 %v1802_v34 }
 0x364   : > { %v2364_v11 = vpop.eup %2363  ;;  %v1767_v32 = vmul.f32 1.442695, %v1756_v60  ;;  %v1775_v35 = vmul.f32 1.442695, %v1760_v59 }
 0x365   : > { %v2366_v0 = vpop.eup %2365  ;;  %v1783_v31 = vsel %vm659_vm1, %v2364_v11, 0.0  ;;  %v1803_v21 = vpack.c.bf16 %v2364_v11, %v2364_v11 }
 0x366   : > { %v2368_v4 = vpop.eup %2367  ;;  %v1801_v45 = vpack.c.bf16 %v2366_v0, %v2366_v0  ;;  %2369 = vpow2.f32 %v1767_v32  ;;  %1784 = vadd.xlane.f32.xlu0 %v1783_v31  ;;  %v1777_v51 = vsel %vm659_vm1, %v2366_v0, 0.0  ;;  %1781 = vadd.xlane.f32.xlu2 %v1780_v3 }
 0x367   : > { %v1806_v46 = vpack.c.bf16 %v2368_v4, %v2368_v4  ;;  %2371 = vpow2.f32 %v1775_v35  ;;  %1778 = vadd.xlane.f32.xlu1 %v1777_v51  ;;  %v1792_v12 = vsel %vm659_vm1, %v2368_v4, 0.0  ;;  %v1839_v36 = vunpack.c.l.b16 %v1803_v21 }
 0x368   : > { %v1811_v63 = vunpack.c.l.b16 %v1801_v45 }
 0x369   : > { %v1868_v29 = vunpack.c.l.b16 %v1806_v46  ;;  %v1749_v5 = vpop.xlane.xlu2 %1748 }
 0x36a   : > { %v1813_v56 = vpack.c.b16 %v1812_v43, %v1811_v63  ;;  %v1759_v6 = vsub.f32 %v3044_v33, %v1749_v5 }
 0x36b   : > { %v1869_v15 = vpack.c.b16 %v1868_v29, %v1867_v61 }
 0x36c   : > { %v2370_v8 = vpop.eup %2369  ;;  %v1773_v18 = vmul.f32 1.442695, %v1759_v6  ;;  %2164 = vmatmul.msk.bf16.vlgmr.msra.gmra.mxu2 %vm659_vm1, %v1813_v56 }
 0x36d   : > { %v2372_v9 = vpop.eup %2371  ;;  %v1804_v22 = vpack.c.bf16 %v2370_v8, %v2370_v8  ;;  %2166 = vmatmul.msk.bf16.vlgmr.msrb.gmra.mxu0 %vm659_vm1, %v1869_v15  ;;  %v1786_v13 = vsel %vm659_vm1, %v2370_v8, 0.0 }
 0x36e   : > { %2373 = vpow2.f32 %v1773_v18  ;;  %1793 = vadd.xlane.f32.xlu0 %v1792_v12  ;;  %v1798_v14 = vsel %vm659_vm1, %v2372_v9, 0.0  ;;  %v1808_v16 = vpack.c.bf16 %v2372_v9, %v2372_v9 }
 0x36f   : > { %v1840_v33 = vunpack.c.l.b16 %v1804_v22  ;;  %1787 = vadd.xlane.f32.xlu1 %v1786_v13  ;;  %1799 = vadd.xlane.f32.xlu2 %v1798_v14 }
 0x370   : > { %v1896_v20 = vunpack.c.l.b16 %v1808_v16 }
 0x371   : > { %v1841_v10 = vpack.c.b16 %v1840_v33, %v1839_v36 }
 0x373   : > { %2165 = vmatmul.msk.bf16.vlgmr.msra.gmra.mxu3 %vm659_vm1, %v1841_v10 }
 0x374   : > { %v2374_v17 = vpop.eup %2373 }
 0x375   : > { %v1807_v19 = vpack.c.bf16 %v2374_v17, %v2374_v17  ;;  %v1795_v37 = vsel %vm659_vm1, %v2374_v17, 0.0 }
 0x377   : > { %v1895_v23 = vunpack.c.l.b16 %v1807_v19  ;;  %1796 = vadd.xlane.f32.xlu1 %v1795_v37 }
 0x379   : > { %v1897_v24 = vpack.c.b16 %v1896_v20, %v1895_v23 }
 0x37b   : > { %2167 = vmatmul.msk.bf16.vlgmr.msrb.gmra.mxu1 %vm659_vm1, %v1897_v24 }
 0x3d1   : > { %v1791_v7 = vpop.xlane.xlu2 %1790 }
 0x3d2   : > { %2375 = vrcp.f32 %v1791_v7 }
 0x3d8   : > { %v2376_v38 = vpop.eup %2375 }
 0x3d9   : > { %v1785_v55 = vpop.xlane.xlu0 %1784  ;;  %v1782_v50 = vpop.xlane.xlu2 %1781 }
 0x3da   : > { %v1779_v25 = vpop.xlane.xlu1 %1778 }
 0x3db   : > { %2377 = vrcp.f32 %v1779_v25 }
 0x3e1   : > { %v1794_v39 = vpop.xlane.xlu0 %1793  ;;  %v2378_v42 = vpop.eup %2377 }
 0x3e2   : > { %v1788_v54 = vpop.xlane.xlu1 %1787  ;;  %2379 = vrcp.f32 %v1794_v39  ;;  %v1800_v2 = vpop.xlane.xlu2 %1799 }
 0x3e3   : > { %2381 = vrcp.f32 %v1785_v55 }
 0x3e4   : > { %2383 = vrcp.f32 %v1782_v50 }
 0x3e8   : > { %v2380_v47 = vpop.eup %2379 }
 0x3e9   : > { %v2382_v58 = vpop.eup %2381 }
 0x3ea   : > { %v1888_v48 = vpop.f32.mrf.mxu0  ;;  %v1797_v40 = vpop.xlane.xlu1 %1796 }
 0x3eb   : > { %v1933_v49 = vmul.f32 %v2376_v38, %v1888_v48  ;;  %2385 = vrcp.f32 %v1797_v40  ;;  %v2384_v30 = vpop.eup %2383 }
 0x3ec   : > { %2387 = vrcp.f32 %v1788_v54 }
 0x3ed   : > { %1941 = vst.msk [vmem:[%s3128_s9 + $0x20] sm:$0xff] %vm659_vm1, %v1933_v49  ;;  %2389 = vrcp.f32 %v1800_v2 }
 0x3ef   : > { %v1832_v41 = vpop.f32.mrf.mxu2 }
 0x3f0   : > { %v1929_v57 = vmul.f32 %v2378_v42, %v1832_v41 }
 0x3f1   : > { %v2386_v53 = vpop.eup %2385 }
 0x3f2   : > { %1937 = vst.msk [vmem:[%s3128_s9] sm:$0xff] %vm659_vm1, %v1929_v57  ;;  %v1890_v1 = vpop.f32.mrf.mxu0  ;;  %v2388_v11 = vpop.eup %2387 }
 0x3f3   : > { %v1934_v52 = vmul.f32 %v2380_v47, %v1890_v1  ;;  %v2390_v35 = vpop.eup %2389 }
 0x3f5   : > { %1942 = vst.msk [vmem:[%s3128_s9 + $0x28] sm:$0xff] %vm659_vm1, %v1934_v52 }
 0x3f6   : > { %v1860_v28 = vpop.f32.mrf.mxu3 }
 0x3f7   : > { %v1931_v26 = vmul.f32 %v2382_v58, %v1860_v28  ;;  %v1834_v27 = vpop.f32.mrf.mxu2 }
 0x3f8   : > { %v1930_v62 = vmul.f32 %v2384_v30, %v1834_v27  ;;  %v1916_v60 = vpop.f32.mrf.mxu1 }
 0x3f9   : > { %1939 = vst.msk [vmem:[%s3128_s9 + $0x10] sm:$0xff] %vm659_vm1, %v1931_v26  ;;  %v1935_v59 = vmul.f32 %v2386_v53, %v1916_v60 }
 0x3fa   : > { %1938 = vst.msk [vmem:[%s3128_s9 + $0x8] sm:$0xff] %vm659_vm1, %v1930_v62 }
 0x3fb   : > { %1943 = vst.msk [vmem:[%s3128_s9 + $0x30] sm:$0xff] %vm659_vm1, %v1935_v59 }
 0x3fe   : > { %v1862_v34 = vpop.f32.mrf.mxu3 }
 0x3ff   : > { %v1932_v32 = vmul.f32 %v2388_v11, %v1862_v34 }
 0x400   : > { %v1918_v0 = vpop.f32.mrf.mxu1 }
 0x401   : > { %1940 = vst.msk [vmem:[%s3128_s9 + $0x18] sm:$0xff] %vm659_vm1, %v1932_v32  ;;  %v1936_v44 = vmul.f32 %v2390_v35, %v1918_v0 }
 0x403   : > { %1944 = vst.msk [vmem:[%s3128_s9 + $0x38] sm:$0xff] %vm659_vm1, %v1936_v44 }
 0x404   : > { %2448 = shalt.err (!%p2445_p13)
}
 0x405   : > { %s2517_s28 = smov 128   ;;  %s2518_s9 = smov 8  }
 0x406   : > { %2177 = dma.vmem_to_hbm [thread:$0]  (%p2610_p9), %s1962_s27, 1024, %s1964_s21, %s1946_s22, %s2517_s28, %s2517_s28, %s2518_s9  }
 0x407 PF: > { %s1978_s18 = sand.u32 1, %s2483_s24   ;;  %p2184_p0 = pnand %p2147_p12, %p2617_p11 }
 0x408   : > { %s1979_s13 = scalar_lea.sflag [#allocation4], %s1978_s18 }
 0x409   : > { %p2185_p1 = pneg %p2184_p0 }
 0x40b   : > { %2478 = dma.done.wait (%p2185_p1), %s1979_s13, 1024  }
 0x40c   : > { %2480 = vsyncadd (%p2185_p1), %s1979_s13, 4294966272  ;;  %s23_s29 = sadd.s32 1, %s2503_s29   ;;  %s3201_s27 = sld [smem:[#allocation8_spill]] }
 0x40d   : > { %p20_p2 = scmp.ge.s32.totalorder %s23_s29, 4   ;;  %s3202_s28 = sld [smem:[#allocation9_spill]] }
 0x40e   : > { %s3203_s24 = smov %s2487_s25  ;;  %s3204_s25 = smov %s2491_s26 }
 0x40f   : > { %s3205_s26 = smov %s2615_s15  ;;  %22 = sbr.rel (!%p20_p2) target bundleno = 6 (0x6), region = 111 }
 0x414   :  { %1985 = vsyncpa [#allocation3], 1 }
 0x415   :  { %1987 = vsyncpa [#allocation3 + $0x1], 1 }
 0x416   :  { %1988 = vsyncpa [#allocation4], 1 }
 0x417   :  { %1990 = vsyncpa [#allocation4 + $0x1], 1 }

</bundles_post_ra>
